<compile_context>
chip_gen: v7x
topology: tpu7x:2x2x1
jax: 0.10.0
libtpu: 0.0.40
codegen_flags: <defaults>
</compile_context>

<pallas_src>
import functools
import math

import jax
import jax.numpy as jnp
from jax.experimental import pallas as pl
from jax.experimental.pallas import tpu as pltpu

D_TOKEN = 32
N_HEADS = 4
N_BLOCKS = 2
D_OUT = 4
LN_EPS = 1e-5
NEG_INF = -1e30


# ----------------------------- kernel helpers -----------------------------
def _layer_norm(x, gamma, beta, eps=LN_EPS):
    mean = jnp.mean(x, axis=-1, keepdims=True)
    var = jnp.mean(jnp.square(x - mean), axis=-1, keepdims=True)
    return (x - mean) * jax.lax.rsqrt(var + eps) * gamma + beta


# ------------------------------ fused kernel -------------------------------
def fused_transformer_kernel(x_ref, wqkv_ref, bqkv_ref, wo_ref, bo_ref,
                             g_attn_ref, b_attn_ref, g_ffn_ref, b_ffn_ref,
                             g_head_ref, b_head_ref, w_head_ref, bw_head_ref,
                             o_ref, *, n_blocks, n_heads, n_tokens):
    BN, D = x_ref.shape
    dh = D // n_heads
    n_batch = BN // n_tokens

    x = x_ref[...]                      # (B*N, D) f32, kept 2D throughout

    # Cross-batch additive mask generated in-kernel (no HBM traffic):
    # mask[i, j] = 0 if i // N == j // N else -1e30.  Batch id is computed
    # via float floor(i * 1/N) (exact here: N is a power of two, i < 2^24).
    inv_n = 1.0 / n_tokens
    r = jax.lax.broadcasted_iota(jnp.int32, (BN, BN), 0).astype(jnp.float32)
    c = jax.lax.broadcasted_iota(jnp.int32, (BN, BN), 1).astype(jnp.float32)
    same_batch = jnp.floor(r * inv_n) == jnp.floor(c * inv_n)
    mask = jnp.where(same_batch, 0.0, NEG_INF)           # (BN, BN) f32

    for blk in range(n_blocks):
        # prenormalization=True, first_prenormalization=False:
        # block 0 has no 'attention_normalization' module.
        if blk > 0:
            x_res = _layer_norm(x, g_attn_ref[blk - 1], b_attn_ref[blk - 1])
        else:
            x_res = x

        # Fused QKV projection; 1/sqrt(dh) folded into the Q columns/bias.
        qkv = jnp.dot(x_res, wqkv_ref[blk],
                      preferred_element_type=jnp.float32) + bqkv_ref[blk]

        # Head-batched attention: stack per-head lane slices -> (H, BN, dh).
        q3 = jnp.stack([qkv[:, h * dh:(h + 1) * dh]
                        for h in range(n_heads)], axis=0)
        k3 = jnp.stack([qkv[:, D + h * dh:D + (h + 1) * dh]
                        for h in range(n_heads)], axis=0)
        v3 = jnp.stack([qkv[:, 2 * D + h * dh:2 * D + (h + 1) * dh]
                        for h in range(n_heads)], axis=0)

        # One batched logits matmul + ONE softmax pass over all heads.
        logits = jnp.einsum('hqd,hkd->hqk', q3, k3,
                            preferred_element_type=jnp.float32) + mask[None]
        m = jnp.max(logits, axis=-1, keepdims=True)
        p = jnp.exp(logits - m)
        denom = jnp.sum(p, axis=-1, keepdims=True)
        p = p * pl.reciprocal(denom, approx=True)
        o3 = jnp.einsum('hqk,hkd->hqd', p, v3,
                        preferred_element_type=jnp.float32)   # (H, BN, dh)

        # Merge heads along lanes and apply W_out as a single matmul.
        o2 = jnp.concatenate([o3[h] for h in range(n_heads)], axis=-1)  # (BN, D)
        attn = jnp.dot(o2, wo_ref[blk],
                       preferred_element_type=jnp.float32) + bo_ref[blk]

        # residual add, then ffn_normalization (_end_residual stage='ffn';
        # layer['ffn'] itself is intentionally never applied, as in the ref).
        x = _layer_norm(x + attn, g_ffn_ref[blk], b_ffn_ref[blk])

    # Head ("Average"): token mean via major-dim reshape + sublane reduce,
    # then LayerNorm -> ReLU -> Linear.
    mtok = jnp.mean(x.reshape(n_batch, n_tokens, D), axis=1)    # (B, D)
    mtok = _layer_norm(mtok, g_head_ref[...], b_head_ref[...])
    mtok = jnp.maximum(mtok, 0.0)
    y = jnp.dot(mtok, w_head_ref[...],
                preferred_element_type=jnp.float32) + bw_head_ref[...]
    o_ref[...] = y.astype(o_ref.dtype)


# ------------------------------ host wrapper -------------------------------
_VMEM = pl.BlockSpec(memory_space=pltpu.MemorySpace.VMEM)


def prepare_params(params):
    """Convert torch-layout params (Dout, Din) into the fused-kernel layout:
    Q|K|V concatenated into one (Din, 3*Dout) weight per block (with the
    attention scale folded into the Q columns), Wo transposed to (Din, Dout),
    everything stacked across blocks."""
    scale = 1.0 / math.sqrt(D_TOKEN // N_HEADS)

    wqkv, bqkv, wo, bo = [], [], [], []
    g_ffn, b_ffn, g_attn, b_attn = [], [], [], []
    for i, p in enumerate(params['blocks']):
        wqkv.append(jnp.concatenate(
            [p['wq'].T * scale, p['wk'].T, p['wv'].T], axis=1))   # (D, 3D)
        bqkv.append(jnp.concatenate(
            [p['bq'] * scale, p['bk'], p['bv']], axis=1))          # (1, 3D)
        wo.append(p['wo'].T)                                       # (D, D)
        bo.append(p['bo'])                                         # (1, D)
        g_ffn.append(p['g_ffn']); b_ffn.append(p['b_ffn'])
        if i > 0:
            g_attn.append(p['g_attn']); b_attn.append(p['b_attn'])

    if g_attn:
        g_attn_s, b_attn_s = jnp.stack(g_attn), jnp.stack(b_attn)
    else:  # N_BLOCKS == 1: unused dummies (kernel never reads them)
        g_attn_s = jnp.ones((1, 1, D_TOKEN), jnp.float32)
        b_attn_s = jnp.zeros((1, 1, D_TOKEN), jnp.float32)

    hp = params['head']
    return dict(
        wqkv=jnp.stack(wqkv), bqkv=jnp.stack(bqkv),
        wo=jnp.stack(wo), bo=jnp.stack(bo),
        g_attn=g_attn_s, b_attn=b_attn_s,
        g_ffn=jnp.stack(g_ffn), b_ffn=jnp.stack(b_ffn),
        g_head=hp['g_head'], b_head=hp['b_head'],
        w_head=hp['w_head'].T, bw_head=hp['bw_head'],
    )


@jax.jit
def transformer_forward(x, kp):
    B, N, D = x.shape
    x2 = x.reshape(B * N, D)

    kernel = functools.partial(fused_transformer_kernel,
                               n_blocks=N_BLOCKS, n_heads=N_HEADS, n_tokens=N)
    out2 = pl.pallas_call(
        kernel,
        out_shape=jax.ShapeDtypeStruct((B, D_OUT), jnp.float32),
        in_specs=[_VMEM] * 13,
        out_specs=_VMEM,
    )(x2, kp['wqkv'], kp['bqkv'], kp['wo'], kp['bo'],
      kp['g_attn'], kp['b_attn'], kp['g_ffn'], kp['b_ffn'],
      kp['g_head'], kp['b_head'], kp['w_head'], kp['bw_head'])
    return out2.reshape(B, 1, D_OUT)


# --------------------------- deterministic init -----------------------------
def init_params(key):
    def linear_init(k, d_out, d_in):
        kw, kb = jax.random.split(k)
        bound = 1.0 / math.sqrt(d_in)
        w = jax.random.uniform(kw, (d_out, d_in), jnp.float32, -bound, bound)
        b = jax.random.uniform(kb, (1, d_out), jnp.float32, -bound, bound)
        return w, b

    blocks = []
    for _ in range(N_BLOCKS):
        key, kq, kk, kv, ko = jax.random.split(key, 5)
        wq, bq = linear_init(kq, D_TOKEN, D_TOKEN)
        wk, bk = linear_init(kk, D_TOKEN, D_TOKEN)
        wv, bv = linear_init(kv, D_TOKEN, D_TOKEN)
        wo, bo = linear_init(ko, D_TOKEN, D_TOKEN)
        blocks.append(dict(
            wq=wq, bq=bq, wk=wk, bk=bk, wv=wv, bv=bv, wo=wo, bo=bo,
            g_attn=jnp.ones((1, D_TOKEN), jnp.float32),
            b_attn=jnp.zeros((1, D_TOKEN), jnp.float32),
            g_ffn=jnp.ones((1, D_TOKEN), jnp.float32),
            b_ffn=jnp.zeros((1, D_TOKEN), jnp.float32),
        ))
        # TODO(synk): layer['ffn'] weights exist in __init__ but are never
        # used by Transformer.forward(), so they are intentionally omitted.
    key, kh = jax.random.split(key)
    w_head, bw_head = linear_init(kh, D_OUT, D_TOKEN)
    head = dict(g_head=jnp.ones((1, D_TOKEN), jnp.float32),
                b_head=jnp.zeros((1, D_TOKEN), jnp.float32),
                w_head=w_head, bw_head=bw_head)
    return dict(blocks=blocks, head=head)


# ------------------------------ pure-JAX ref --------------------------------
def reference_forward(x, params):
    def ln(t, g, b):
        mu = t.mean(-1, keepdims=True)
        var = ((t - mu) ** 2).mean(-1, keepdims=True)
        return (t - mu) / jnp.sqrt(var + LN_EPS) * g + b

    B, N, D = x.shape
    dh = D // N_HEADS
    for i, p in enumerate(params['blocks']):
        xr = ln(x, p['g_attn'], p['b_attn']) if i > 0 else x
        q = xr @ p['wq'].T + p['bq']
        k = xr @ p['wk'].T + p['bk']
        v = xr @ p['wv'].T + p['bv']
        split = lambda t: t.reshape(B, N, N_HEADS, dh).transpose(0, 2, 1, 3)
        qh, kh, vh = split(q), split(k), split(v)
        logits = jnp.einsum('bhqd,bhkd->bhqk', qh, kh) / math.sqrt(dh)
        probs = jax.nn.softmax(logits, axis=-1)
        o = jnp.einsum('bhqk,bhkd->bhqd', probs, vh)
        o = o.transpose(0, 2, 1, 3).reshape(B, N, D)
        o = o @ p['wo'].T + p['bo']
        x = ln(x + o, p['g_ffn'], p['b_ffn'])
    hp = params['head']
    m = jnp.mean(x, axis=1, keepdims=True)
    m = jnp.maximum(ln(m, hp['g_head'], hp['b_head']), 0.0)
    return m @ hp['w_head'].T + hp['bw_head']


if __name__ == "__main__":
    key = jax.random.PRNGKey(0)
    kx, kparam = jax.random.split(key)
    B, N = 2, 8
    x = jax.random.normal(kx, (B, N, D_TOKEN), jnp.float32)
    params = init_params(kparam)
    kernel_params = prepare_params(params)

    out = jax.block_until_ready(transformer_forward(x, kernel_params))
    ref = reference_forward(x, params)

    assert out.shape == (B, 1, D_OUT), out.shape
    assert jnp.allclose(out, ref, atol=2e-3, rtol=2e-3), \
        float(jnp.max(jnp.abs(out - ref)))
    print("KERNEL_OK")
</pallas_src>

<mosaic_0001>
module attributes {stable_mosaic.version = 11 : i64} {
  func.func @fused_transformer_kernel(%arg0: memref<16x32xf32, #tpu.memory_space<vmem>>, %arg1: memref<2x32x96xf32, #tpu.memory_space<vmem>>, %arg2: memref<2x1x96xf32, #tpu.memory_space<vmem>>, %arg3: memref<2x32x32xf32, #tpu.memory_space<vmem>>, %arg4: memref<2x1x32xf32, #tpu.memory_space<vmem>>, %arg5: memref<1x1x32xf32, #tpu.memory_space<vmem>>, %arg6: memref<1x1x32xf32, #tpu.memory_space<vmem>>, %arg7: memref<2x1x32xf32, #tpu.memory_space<vmem>>, %arg8: memref<2x1x32xf32, #tpu.memory_space<vmem>>, %arg9: memref<1x32xf32, #tpu.memory_space<vmem>>, %arg10: memref<1x32xf32, #tpu.memory_space<vmem>>, %arg11: memref<32x4xf32, #tpu.memory_space<vmem>>, %arg12: memref<1x4xf32, #tpu.memory_space<vmem>>, %arg13: memref<2x4xf32, #tpu.memory_space<vmem>>) attributes {dimension_semantics = [], scalar_prefetch = 0 : i64, scratch_operands = 0 : i64, tpu.core_type = #tpu.core_type<tc>} {
    %c0 = arith.constant 0 : index
    %c0_0 = arith.constant 0 : index
    %0 = vector.load %arg0[%c0, %c0_0] : memref<16x32xf32, #tpu.memory_space<vmem>>, vector<16x32xf32>
    %1 = tpu.iota {dimensions = array<i32: 0>} : vector<16x16xi32>
    %2 = arith.sitofp %1 : vector<16x16xi32> to vector<16x16xf32>
    %3 = tpu.iota {dimensions = array<i32: 1>} : vector<16x16xi32>
    %4 = arith.sitofp %3 : vector<16x16xi32> to vector<16x16xf32>
    %cst = arith.constant 1.250000e-01 : f32
    %5 = vector.broadcast %cst : f32 to vector<16x16xf32>
    %6 = arith.mulf %2, %5 : vector<16x16xf32>
    %7 = math.floor %6 : vector<16x16xf32>
    %cst_1 = arith.constant 1.250000e-01 : f32
    %8 = vector.broadcast %cst_1 : f32 to vector<16x16xf32>
    %9 = arith.mulf %4, %8 : vector<16x16xf32>
    %10 = math.floor %9 : vector<16x16xf32>
    %11 = arith.cmpf oeq, %7, %10 : vector<16x16xf32>
    %cst_2 = arith.constant 0.000000e+00 : f32
    %cst_3 = arith.constant -1.000000e+30 : f32
    %12 = vector.broadcast %cst_2 : f32 to vector<16x16xf32>
    %13 = vector.broadcast %cst_3 : f32 to vector<16x16xf32>
    %14 = arith.select %11, %12, %13 : vector<16x16xi1>, vector<16x16xf32>
    %c0_4 = arith.constant 0 : index
    %c0_5 = arith.constant 0 : index
    %c0_6 = arith.constant 0 : index
    %15 = vector.load %arg1[%c0_4, %c0_5, %c0_6] : memref<2x32x96xf32, #tpu.memory_space<vmem>>, vector<1x32x96xf32>
    %16 = vector.shape_cast %15 : vector<1x32x96xf32> to vector<32x96xf32>
    %cst_7 = arith.constant dense<0.000000e+00> : vector<16x96xf32>
    %17 = tpu.matmul %0, %16, %cst_7 {dimension_numbers = #tpu.dot_dimension_numbers<[1], [0], [0], [1], [0, 0, 1, 1], [], []>} : vector<16x32xf32>, vector<32x96xf32>, vector<16x96xf32> -> vector<16x96xf32>
    %c0_8 = arith.constant 0 : index
    %c0_9 = arith.constant 0 : index
    %c0_10 = arith.constant 0 : index
    %18 = vector.load %arg2[%c0_8, %c0_9, %c0_10] : memref<2x1x96xf32, #tpu.memory_space<vmem>>, vector<1x1x96xf32>
    %19 = vector.shape_cast %18 : vector<1x1x96xf32> to vector<1x96xf32>
    %20 = vector.broadcast %19 : vector<1x96xf32> to vector<16x96xf32>
    %21 = arith.addf %17, %20 : vector<16x96xf32>
    %22 = vector.extract_strided_slice %21 {offsets = [0, 0], sizes = [16, 8], strides = [1, 1]} : vector<16x96xf32> to vector<16x8xf32>
    %23 = vector.extract_strided_slice %21 {offsets = [0, 8], sizes = [16, 8], strides = [1, 1]} : vector<16x96xf32> to vector<16x8xf32>
    %24 = vector.extract_strided_slice %21 {offsets = [0, 16], sizes = [16, 8], strides = [1, 1]} : vector<16x96xf32> to vector<16x8xf32>
    %25 = vector.extract_strided_slice %21 {offsets = [0, 24], sizes = [16, 8], strides = [1, 1]} : vector<16x96xf32> to vector<16x8xf32>
    %26 = vector.shape_cast %22 : vector<16x8xf32> to vector<1x16x8xf32>
    %27 = vector.shape_cast %23 : vector<16x8xf32> to vector<1x16x8xf32>
    %28 = vector.shape_cast %24 : vector<16x8xf32> to vector<1x16x8xf32>
    %29 = vector.shape_cast %25 : vector<16x8xf32> to vector<1x16x8xf32>
    %30 = tpu.concatenate %26, %27, %28, %29 in 0 : vector<1x16x8xf32>, vector<1x16x8xf32>, vector<1x16x8xf32>, vector<1x16x8xf32> -> vector<4x16x8xf32>
    %31 = vector.extract_strided_slice %21 {offsets = [0, 32], sizes = [16, 8], strides = [1, 1]} : vector<16x96xf32> to vector<16x8xf32>
    %32 = vector.extract_strided_slice %21 {offsets = [0, 40], sizes = [16, 8], strides = [1, 1]} : vector<16x96xf32> to vector<16x8xf32>
    %33 = vector.extract_strided_slice %21 {offsets = [0, 48], sizes = [16, 8], strides = [1, 1]} : vector<16x96xf32> to vector<16x8xf32>
    %34 = vector.extract_strided_slice %21 {offsets = [0, 56], sizes = [16, 8], strides = [1, 1]} : vector<16x96xf32> to vector<16x8xf32>
    %35 = vector.shape_cast %31 : vector<16x8xf32> to vector<1x16x8xf32>
    %36 = vector.shape_cast %32 : vector<16x8xf32> to vector<1x16x8xf32>
    %37 = vector.shape_cast %33 : vector<16x8xf32> to vector<1x16x8xf32>
    %38 = vector.shape_cast %34 : vector<16x8xf32> to vector<1x16x8xf32>
    %39 = tpu.concatenate %35, %36, %37, %38 in 0 : vector<1x16x8xf32>, vector<1x16x8xf32>, vector<1x16x8xf32>, vector<1x16x8xf32> -> vector<4x16x8xf32>
    %40 = vector.extract_strided_slice %21 {offsets = [0, 64], sizes = [16, 8], strides = [1, 1]} : vector<16x96xf32> to vector<16x8xf32>
    %41 = vector.extract_strided_slice %21 {offsets = [0, 72], sizes = [16, 8], strides = [1, 1]} : vector<16x96xf32> to vector<16x8xf32>
    %42 = vector.extract_strided_slice %21 {offsets = [0, 80], sizes = [16, 8], strides = [1, 1]} : vector<16x96xf32> to vector<16x8xf32>
    %43 = vector.extract_strided_slice %21 {offsets = [0, 88], sizes = [16, 8], strides = [1, 1]} : vector<16x96xf32> to vector<16x8xf32>
    %44 = vector.shape_cast %40 : vector<16x8xf32> to vector<1x16x8xf32>
    %45 = vector.shape_cast %41 : vector<16x8xf32> to vector<1x16x8xf32>
    %46 = vector.shape_cast %42 : vector<16x8xf32> to vector<1x16x8xf32>
    %47 = vector.shape_cast %43 : vector<16x8xf32> to vector<1x16x8xf32>
    %48 = tpu.concatenate %44, %45, %46, %47 in 0 : vector<1x16x8xf32>, vector<1x16x8xf32>, vector<1x16x8xf32>, vector<1x16x8xf32> -> vector<4x16x8xf32>
    "tpu.trace_start"() <{level = 10 : i32, message = "hqd,hkd->hqk"}> : () -> ()
    %cst_11 = arith.constant dense<0.000000e+00> : vector<4x16x16xf32>
    %49 = tpu.matmul %30, %39, %cst_11 {dimension_numbers = #tpu.dot_dimension_numbers<[2], [2], [1], [1], [0, 0, 0, 1, 1, 1], [0], [0]>} : vector<4x16x8xf32>, vector<4x16x8xf32>, vector<4x16x16xf32> -> vector<4x16x16xf32>
    "tpu.trace_stop"() : () -> ()
    %50 = vector.shape_cast %14 : vector<16x16xf32> to vector<1x16x16xf32>
    %51 = vector.broadcast %50 : vector<1x16x16xf32> to vector<4x16x16xf32>
    %52 = arith.addf %49, %51 : vector<4x16x16xf32>
    %cst_12 = arith.constant dense<0xFF800000> : vector<4x16xf32>
    %53 = vector.multi_reduction <maximumf>, %52, %cst_12 [2] : vector<4x16x16xf32> to vector<4x16xf32>
    %54 = vector.shape_cast %53 : vector<4x16xf32> to vector<4x16x1xf32>
    %55 = vector.broadcast %54 : vector<4x16x1xf32> to vector<4x16x16xf32>
    %56 = arith.subf %52, %55 : vector<4x16x16xf32>
    %57 = math.exp %56 : vector<4x16x16xf32>
    %cst_13 = arith.constant dense<0.000000e+00> : vector<4x16xf32>
    %58 = vector.multi_reduction <add>, %57, %cst_13 [2] : vector<4x16x16xf32> to vector<4x16xf32>
    %59 = vector.shape_cast %58 : vector<4x16xf32> to vector<4x16x1xf32>
    %60 = tpu.reciprocal %59 {approx = true} : vector<4x16x1xf32> -> vector<4x16x1xf32>
    %61 = vector.broadcast %60 : vector<4x16x1xf32> to vector<4x16x16xf32>
    %62 = arith.mulf %57, %61 : vector<4x16x16xf32>
    "tpu.trace_start"() <{level = 10 : i32, message = "hqk,hkd->hqd"}> : () -> ()
    %cst_14 = arith.constant dense<0.000000e+00> : vector<4x16x8xf32>
    %63 = tpu.matmul %62, %48, %cst_14 {dimension_numbers = #tpu.dot_dimension_numbers<[2], [1], [1], [2], [0, 0, 0, 1, 1, 2], [0], [0]>} : vector<4x16x16xf32>, vector<4x16x8xf32>, vector<4x16x8xf32> -> vector<4x16x8xf32>
    "tpu.trace_stop"() : () -> ()
    %64 = vector.extract_strided_slice %63 {offsets = [0, 0, 0], sizes = [1, 16, 8], strides = [1, 1, 1]} : vector<4x16x8xf32> to vector<1x16x8xf32>
    %65 = vector.shape_cast %64 : vector<1x16x8xf32> to vector<16x8xf32>
    %66 = vector.extract_strided_slice %63 {offsets = [1, 0, 0], sizes = [1, 16, 8], strides = [1, 1, 1]} : vector<4x16x8xf32> to vector<1x16x8xf32>
    %67 = vector.shape_cast %66 : vector<1x16x8xf32> to vector<16x8xf32>
    %68 = vector.extract_strided_slice %63 {offsets = [2, 0, 0], sizes = [1, 16, 8], strides = [1, 1, 1]} : vector<4x16x8xf32> to vector<1x16x8xf32>
    %69 = vector.shape_cast %68 : vector<1x16x8xf32> to vector<16x8xf32>
    %70 = vector.extract_strided_slice %63 {offsets = [3, 0, 0], sizes = [1, 16, 8], strides = [1, 1, 1]} : vector<4x16x8xf32> to vector<1x16x8xf32>
    %71 = vector.shape_cast %70 : vector<1x16x8xf32> to vector<16x8xf32>
    %72 = tpu.concatenate %65, %67, %69, %71 in 1 : vector<16x8xf32>, vector<16x8xf32>, vector<16x8xf32>, vector<16x8xf32> -> vector<16x32xf32>
    %c0_15 = arith.constant 0 : index
    %c0_16 = arith.constant 0 : index
    %c0_17 = arith.constant 0 : index
    %73 = vector.load %arg3[%c0_15, %c0_16, %c0_17] : memref<2x32x32xf32, #tpu.memory_space<vmem>>, vector<1x32x32xf32>
    %74 = vector.shape_cast %73 : vector<1x32x32xf32> to vector<32x32xf32>
    %cst_18 = arith.constant dense<0.000000e+00> : vector<16x32xf32>
    %75 = tpu.matmul %72, %74, %cst_18 {dimension_numbers = #tpu.dot_dimension_numbers<[1], [0], [0], [1], [0, 0, 1, 1], [], []>} : vector<16x32xf32>, vector<32x32xf32>, vector<16x32xf32> -> vector<16x32xf32>
    %c0_19 = arith.constant 0 : index
    %c0_20 = arith.constant 0 : index
    %c0_21 = arith.constant 0 : index
    %76 = vector.load %arg4[%c0_19, %c0_20, %c0_21] : memref<2x1x32xf32, #tpu.memory_space<vmem>>, vector<1x1x32xf32>
    %77 = vector.shape_cast %76 : vector<1x1x32xf32> to vector<1x32xf32>
    %78 = vector.broadcast %77 : vector<1x32xf32> to vector<16x32xf32>
    %79 = arith.addf %75, %78 : vector<16x32xf32>
    %80 = arith.addf %0, %79 : vector<16x32xf32>
    %c0_22 = arith.constant 0 : index
    %c0_23 = arith.constant 0 : index
    %c0_24 = arith.constant 0 : index
    %81 = vector.load %arg7[%c0_22, %c0_23, %c0_24] : memref<2x1x32xf32, #tpu.memory_space<vmem>>, vector<1x1x32xf32>
    %82 = vector.shape_cast %81 : vector<1x1x32xf32> to vector<1x32xf32>
    %c0_25 = arith.constant 0 : index
    %c0_26 = arith.constant 0 : index
    %c0_27 = arith.constant 0 : index
    %83 = vector.load %arg8[%c0_25, %c0_26, %c0_27] : memref<2x1x32xf32, #tpu.memory_space<vmem>>, vector<1x1x32xf32>
    %84 = vector.shape_cast %83 : vector<1x1x32xf32> to vector<1x32xf32>
    %cst_28 = arith.constant dense<0.000000e+00> : vector<16xf32>
    %85 = vector.multi_reduction <add>, %80, %cst_28 [1] : vector<16x32xf32> to vector<16xf32>
    %86 = vector.shape_cast %85 : vector<16xf32> to vector<16x1xf32>
    %cst_29 = arith.constant 3.200000e+01 : f32
    %87 = vector.broadcast %cst_29 : f32 to vector<16x1xf32>
    %88 = arith.divf %86, %87 : vector<16x1xf32>
    %89 = vector.broadcast %88 : vector<16x1xf32> to vector<16x32xf32>
    %90 = arith.subf %80, %89 : vector<16x32xf32>
    %91 = arith.mulf %90, %90 : vector<16x32xf32>
    %cst_30 = arith.constant dense<0.000000e+00> : vector<16xf32>
    %92 = vector.multi_reduction <add>, %91, %cst_30 [1] : vector<16x32xf32> to vector<16xf32>
    %93 = vector.shape_cast %92 : vector<16xf32> to vector<16x1xf32>
    %cst_31 = arith.constant 3.200000e+01 : f32
    %94 = vector.broadcast %cst_31 : f32 to vector<16x1xf32>
    %95 = arith.divf %93, %94 : vector<16x1xf32>
    %96 = vector.broadcast %88 : vector<16x1xf32> to vector<16x32xf32>
    %97 = arith.subf %80, %96 : vector<16x32xf32>
    %cst_32 = arith.constant 9.99999974E-6 : f32
    %98 = vector.broadcast %cst_32 : f32 to vector<16x1xf32>
    %99 = arith.addf %95, %98 : vector<16x1xf32>
    %100 = math.rsqrt %99 : vector<16x1xf32>
    %101 = vector.broadcast %100 : vector<16x1xf32> to vector<16x32xf32>
    %102 = arith.mulf %97, %101 : vector<16x32xf32>
    %103 = vector.broadcast %82 : vector<1x32xf32> to vector<16x32xf32>
    %104 = arith.mulf %102, %103 : vector<16x32xf32>
    %105 = vector.broadcast %84 : vector<1x32xf32> to vector<16x32xf32>
    %106 = arith.addf %104, %105 : vector<16x32xf32>
    %c0_33 = arith.constant 0 : index
    %c0_34 = arith.constant 0 : index
    %c0_35 = arith.constant 0 : index
    %107 = vector.load %arg5[%c0_33, %c0_34, %c0_35] : memref<1x1x32xf32, #tpu.memory_space<vmem>>, vector<1x1x32xf32>
    %108 = vector.shape_cast %107 : vector<1x1x32xf32> to vector<1x32xf32>
    %c0_36 = arith.constant 0 : index
    %c0_37 = arith.constant 0 : index
    %c0_38 = arith.constant 0 : index
    %109 = vector.load %arg6[%c0_36, %c0_37, %c0_38] : memref<1x1x32xf32, #tpu.memory_space<vmem>>, vector<1x1x32xf32>
    %110 = vector.shape_cast %109 : vector<1x1x32xf32> to vector<1x32xf32>
    %cst_39 = arith.constant dense<0.000000e+00> : vector<16xf32>
    %111 = vector.multi_reduction <add>, %106, %cst_39 [1] : vector<16x32xf32> to vector<16xf32>
    %112 = vector.shape_cast %111 : vector<16xf32> to vector<16x1xf32>
    %cst_40 = arith.constant 3.200000e+01 : f32
    %113 = vector.broadcast %cst_40 : f32 to vector<16x1xf32>
    %114 = arith.divf %112, %113 : vector<16x1xf32>
    %115 = vector.broadcast %114 : vector<16x1xf32> to vector<16x32xf32>
    %116 = arith.subf %106, %115 : vector<16x32xf32>
    %117 = arith.mulf %116, %116 : vector<16x32xf32>
    %cst_41 = arith.constant dense<0.000000e+00> : vector<16xf32>
    %118 = vector.multi_reduction <add>, %117, %cst_41 [1] : vector<16x32xf32> to vector<16xf32>
    %119 = vector.shape_cast %118 : vector<16xf32> to vector<16x1xf32>
    %cst_42 = arith.constant 3.200000e+01 : f32
    %120 = vector.broadcast %cst_42 : f32 to vector<16x1xf32>
    %121 = arith.divf %119, %120 : vector<16x1xf32>
    %122 = vector.broadcast %114 : vector<16x1xf32> to vector<16x32xf32>
    %123 = arith.subf %106, %122 : vector<16x32xf32>
    %cst_43 = arith.constant 9.99999974E-6 : f32
    %124 = vector.broadcast %cst_43 : f32 to vector<16x1xf32>
    %125 = arith.addf %121, %124 : vector<16x1xf32>
    %126 = math.rsqrt %125 : vector<16x1xf32>
    %127 = vector.broadcast %126 : vector<16x1xf32> to vector<16x32xf32>
    %128 = arith.mulf %123, %127 : vector<16x32xf32>
    %129 = vector.broadcast %108 : vector<1x32xf32> to vector<16x32xf32>
    %130 = arith.mulf %128, %129 : vector<16x32xf32>
    %131 = vector.broadcast %110 : vector<1x32xf32> to vector<16x32xf32>
    %132 = arith.addf %130, %131 : vector<16x32xf32>
    %c1 = arith.constant 1 : index
    %c0_44 = arith.constant 0 : index
    %c0_45 = arith.constant 0 : index
    %133 = vector.load %arg1[%c1, %c0_44, %c0_45] : memref<2x32x96xf32, #tpu.memory_space<vmem>>, vector<1x32x96xf32>
    %134 = vector.shape_cast %133 : vector<1x32x96xf32> to vector<32x96xf32>
    %cst_46 = arith.constant dense<0.000000e+00> : vector<16x96xf32>
    %135 = tpu.matmul %132, %134, %cst_46 {dimension_numbers = #tpu.dot_dimension_numbers<[1], [0], [0], [1], [0, 0, 1, 1], [], []>} : vector<16x32xf32>, vector<32x96xf32>, vector<16x96xf32> -> vector<16x96xf32>
    %c1_47 = arith.constant 1 : index
    %c0_48 = arith.constant 0 : index
    %c0_49 = arith.constant 0 : index
    %136 = vector.load %arg2[%c1_47, %c0_48, %c0_49] : memref<2x1x96xf32, #tpu.memory_space<vmem>>, vector<1x1x96xf32>
    %137 = vector.shape_cast %136 : vector<1x1x96xf32> to vector<1x96xf32>
    %138 = vector.broadcast %137 : vector<1x96xf32> to vector<16x96xf32>
    %139 = arith.addf %135, %138 : vector<16x96xf32>
    %140 = vector.extract_strided_slice %139 {offsets = [0, 0], sizes = [16, 8], strides = [1, 1]} : vector<16x96xf32> to vector<16x8xf32>
    %141 = vector.extract_strided_slice %139 {offsets = [0, 8], sizes = [16, 8], strides = [1, 1]} : vector<16x96xf32> to vector<16x8xf32>
    %142 = vector.extract_strided_slice %139 {offsets = [0, 16], sizes = [16, 8], strides = [1, 1]} : vector<16x96xf32> to vector<16x8xf32>
    %143 = vector.extract_strided_slice %139 {offsets = [0, 24], sizes = [16, 8], strides = [1, 1]} : vector<16x96xf32> to vector<16x8xf32>
    %144 = vector.shape_cast %140 : vector<16x8xf32> to vector<1x16x8xf32>
    %145 = vector.shape_cast %141 : vector<16x8xf32> to vector<1x16x8xf32>
    %146 = vector.shape_cast %142 : vector<16x8xf32> to vector<1x16x8xf32>
    %147 = vector.shape_cast %143 : vector<16x8xf32> to vector<1x16x8xf32>
    %148 = tpu.concatenate %144, %145, %146, %147 in 0 : vector<1x16x8xf32>, vector<1x16x8xf32>, vector<1x16x8xf32>, vector<1x16x8xf32> -> vector<4x16x8xf32>
    %149 = vector.extract_strided_slice %139 {offsets = [0, 32], sizes = [16, 8], strides = [1, 1]} : vector<16x96xf32> to vector<16x8xf32>
    %150 = vector.extract_strided_slice %139 {offsets = [0, 40], sizes = [16, 8], strides = [1, 1]} : vector<16x96xf32> to vector<16x8xf32>
    %151 = vector.extract_strided_slice %139 {offsets = [0, 48], sizes = [16, 8], strides = [1, 1]} : vector<16x96xf32> to vector<16x8xf32>
    %152 = vector.extract_strided_slice %139 {offsets = [0, 56], sizes = [16, 8], strides = [1, 1]} : vector<16x96xf32> to vector<16x8xf32>
    %153 = vector.shape_cast %149 : vector<16x8xf32> to vector<1x16x8xf32>
    %154 = vector.shape_cast %150 : vector<16x8xf32> to vector<1x16x8xf32>
    %155 = vector.shape_cast %151 : vector<16x8xf32> to vector<1x16x8xf32>
    %156 = vector.shape_cast %152 : vector<16x8xf32> to vector<1x16x8xf32>
    %157 = tpu.concatenate %153, %154, %155, %156 in 0 : vector<1x16x8xf32>, vector<1x16x8xf32>, vector<1x16x8xf32>, vector<1x16x8xf32> -> vector<4x16x8xf32>
    %158 = vector.extract_strided_slice %139 {offsets = [0, 64], sizes = [16, 8], strides = [1, 1]} : vector<16x96xf32> to vector<16x8xf32>
    %159 = vector.extract_strided_slice %139 {offsets = [0, 72], sizes = [16, 8], strides = [1, 1]} : vector<16x96xf32> to vector<16x8xf32>
    %160 = vector.extract_strided_slice %139 {offsets = [0, 80], sizes = [16, 8], strides = [1, 1]} : vector<16x96xf32> to vector<16x8xf32>
    %161 = vector.extract_strided_slice %139 {offsets = [0, 88], sizes = [16, 8], strides = [1, 1]} : vector<16x96xf32> to vector<16x8xf32>
    %162 = vector.shape_cast %158 : vector<16x8xf32> to vector<1x16x8xf32>
    %163 = vector.shape_cast %159 : vector<16x8xf32> to vector<1x16x8xf32>
    %164 = vector.shape_cast %160 : vector<16x8xf32> to vector<1x16x8xf32>
    %165 = vector.shape_cast %161 : vector<16x8xf32> to vector<1x16x8xf32>
    %166 = tpu.concatenate %162, %163, %164, %165 in 0 : vector<1x16x8xf32>, vector<1x16x8xf32>, vector<1x16x8xf32>, vector<1x16x8xf32> -> vector<4x16x8xf32>
    "tpu.trace_start"() <{level = 10 : i32, message = "hqd,hkd->hqk"}> : () -> ()
    %cst_50 = arith.constant dense<0.000000e+00> : vector<4x16x16xf32>
    %167 = tpu.matmul %148, %157, %cst_50 {dimension_numbers = #tpu.dot_dimension_numbers<[2], [2], [1], [1], [0, 0, 0, 1, 1, 1], [0], [0]>} : vector<4x16x8xf32>, vector<4x16x8xf32>, vector<4x16x16xf32> -> vector<4x16x16xf32>
    "tpu.trace_stop"() : () -> ()
    %168 = vector.shape_cast %14 : vector<16x16xf32> to vector<1x16x16xf32>
    %169 = vector.broadcast %168 : vector<1x16x16xf32> to vector<4x16x16xf32>
    %170 = arith.addf %167, %169 : vector<4x16x16xf32>
    %cst_51 = arith.constant dense<0xFF800000> : vector<4x16xf32>
    %171 = vector.multi_reduction <maximumf>, %170, %cst_51 [2] : vector<4x16x16xf32> to vector<4x16xf32>
    %172 = vector.shape_cast %171 : vector<4x16xf32> to vector<4x16x1xf32>
    %173 = vector.broadcast %172 : vector<4x16x1xf32> to vector<4x16x16xf32>
    %174 = arith.subf %170, %173 : vector<4x16x16xf32>
    %175 = math.exp %174 : vector<4x16x16xf32>
    %cst_52 = arith.constant dense<0.000000e+00> : vector<4x16xf32>
    %176 = vector.multi_reduction <add>, %175, %cst_52 [2] : vector<4x16x16xf32> to vector<4x16xf32>
    %177 = vector.shape_cast %176 : vector<4x16xf32> to vector<4x16x1xf32>
    %178 = tpu.reciprocal %177 {approx = true} : vector<4x16x1xf32> -> vector<4x16x1xf32>
    %179 = vector.broadcast %178 : vector<4x16x1xf32> to vector<4x16x16xf32>
    %180 = arith.mulf %175, %179 : vector<4x16x16xf32>
    "tpu.trace_start"() <{level = 10 : i32, message = "hqk,hkd->hqd"}> : () -> ()
    %cst_53 = arith.constant dense<0.000000e+00> : vector<4x16x8xf32>
    %181 = tpu.matmul %180, %166, %cst_53 {dimension_numbers = #tpu.dot_dimension_numbers<[2], [1], [1], [2], [0, 0, 0, 1, 1, 2], [0], [0]>} : vector<4x16x16xf32>, vector<4x16x8xf32>, vector<4x16x8xf32> -> vector<4x16x8xf32>
    "tpu.trace_stop"() : () -> ()
    %182 = vector.extract_strided_slice %181 {offsets = [0, 0, 0], sizes = [1, 16, 8], strides = [1, 1, 1]} : vector<4x16x8xf32> to vector<1x16x8xf32>
    %183 = vector.shape_cast %182 : vector<1x16x8xf32> to vector<16x8xf32>
    %184 = vector.extract_strided_slice %181 {offsets = [1, 0, 0], sizes = [1, 16, 8], strides = [1, 1, 1]} : vector<4x16x8xf32> to vector<1x16x8xf32>
    %185 = vector.shape_cast %184 : vector<1x16x8xf32> to vector<16x8xf32>
    %186 = vector.extract_strided_slice %181 {offsets = [2, 0, 0], sizes = [1, 16, 8], strides = [1, 1, 1]} : vector<4x16x8xf32> to vector<1x16x8xf32>
    %187 = vector.shape_cast %186 : vector<1x16x8xf32> to vector<16x8xf32>
    %188 = vector.extract_strided_slice %181 {offsets = [3, 0, 0], sizes = [1, 16, 8], strides = [1, 1, 1]} : vector<4x16x8xf32> to vector<1x16x8xf32>
    %189 = vector.shape_cast %188 : vector<1x16x8xf32> to vector<16x8xf32>
    %190 = tpu.concatenate %183, %185, %187, %189 in 1 : vector<16x8xf32>, vector<16x8xf32>, vector<16x8xf32>, vector<16x8xf32> -> vector<16x32xf32>
    %c1_54 = arith.constant 1 : index
    %c0_55 = arith.constant 0 : index
    %c0_56 = arith.constant 0 : index
    %191 = vector.load %arg3[%c1_54, %c0_55, %c0_56] : memref<2x32x32xf32, #tpu.memory_space<vmem>>, vector<1x32x32xf32>
    %192 = vector.shape_cast %191 : vector<1x32x32xf32> to vector<32x32xf32>
    %cst_57 = arith.constant dense<0.000000e+00> : vector<16x32xf32>
    %193 = tpu.matmul %190, %192, %cst_57 {dimension_numbers = #tpu.dot_dimension_numbers<[1], [0], [0], [1], [0, 0, 1, 1], [], []>} : vector<16x32xf32>, vector<32x32xf32>, vector<16x32xf32> -> vector<16x32xf32>
    %c1_58 = arith.constant 1 : index
    %c0_59 = arith.constant 0 : index
    %c0_60 = arith.constant 0 : index
    %194 = vector.load %arg4[%c1_58, %c0_59, %c0_60] : memref<2x1x32xf32, #tpu.memory_space<vmem>>, vector<1x1x32xf32>
    %195 = vector.shape_cast %194 : vector<1x1x32xf32> to vector<1x32xf32>
    %196 = vector.broadcast %195 : vector<1x32xf32> to vector<16x32xf32>
    %197 = arith.addf %193, %196 : vector<16x32xf32>
    %198 = arith.addf %106, %197 : vector<16x32xf32>
    %c1_61 = arith.constant 1 : index
    %c0_62 = arith.constant 0 : index
    %c0_63 = arith.constant 0 : index
    %199 = vector.load %arg7[%c1_61, %c0_62, %c0_63] : memref<2x1x32xf32, #tpu.memory_space<vmem>>, vector<1x1x32xf32>
    %200 = vector.shape_cast %199 : vector<1x1x32xf32> to vector<1x32xf32>
    %c1_64 = arith.constant 1 : index
    %c0_65 = arith.constant 0 : index
    %c0_66 = arith.constant 0 : index
    %201 = vector.load %arg8[%c1_64, %c0_65, %c0_66] : memref<2x1x32xf32, #tpu.memory_space<vmem>>, vector<1x1x32xf32>
    %202 = vector.shape_cast %201 : vector<1x1x32xf32> to vector<1x32xf32>
    %cst_67 = arith.constant dense<0.000000e+00> : vector<16xf32>
    %203 = vector.multi_reduction <add>, %198, %cst_67 [1] : vector<16x32xf32> to vector<16xf32>
    %204 = vector.shape_cast %203 : vector<16xf32> to vector<16x1xf32>
    %cst_68 = arith.constant 3.200000e+01 : f32
    %205 = vector.broadcast %cst_68 : f32 to vector<16x1xf32>
    %206 = arith.divf %204, %205 : vector<16x1xf32>
    %207 = vector.broadcast %206 : vector<16x1xf32> to vector<16x32xf32>
    %208 = arith.subf %198, %207 : vector<16x32xf32>
    %209 = arith.mulf %208, %208 : vector<16x32xf32>
    %cst_69 = arith.constant dense<0.000000e+00> : vector<16xf32>
    %210 = vector.multi_reduction <add>, %209, %cst_69 [1] : vector<16x32xf32> to vector<16xf32>
    %211 = vector.shape_cast %210 : vector<16xf32> to vector<16x1xf32>
    %cst_70 = arith.constant 3.200000e+01 : f32
    %212 = vector.broadcast %cst_70 : f32 to vector<16x1xf32>
    %213 = arith.divf %211, %212 : vector<16x1xf32>
    %214 = vector.broadcast %206 : vector<16x1xf32> to vector<16x32xf32>
    %215 = arith.subf %198, %214 : vector<16x32xf32>
    %cst_71 = arith.constant 9.99999974E-6 : f32
    %216 = vector.broadcast %cst_71 : f32 to vector<16x1xf32>
    %217 = arith.addf %213, %216 : vector<16x1xf32>
    %218 = math.rsqrt %217 : vector<16x1xf32>
    %219 = vector.broadcast %218 : vector<16x1xf32> to vector<16x32xf32>
    %220 = arith.mulf %215, %219 : vector<16x32xf32>
    %221 = vector.broadcast %200 : vector<1x32xf32> to vector<16x32xf32>
    %222 = arith.mulf %220, %221 : vector<16x32xf32>
    %223 = vector.broadcast %202 : vector<1x32xf32> to vector<16x32xf32>
    %224 = arith.addf %222, %223 : vector<16x32xf32>
    %225 = vector.shape_cast %224 : vector<16x32xf32> to vector<2x8x32xf32>
    %cst_72 = arith.constant dense<0.000000e+00> : vector<2x32xf32>
    %226 = vector.multi_reduction <add>, %225, %cst_72 [1] : vector<2x8x32xf32> to vector<2x32xf32>
    %cst_73 = arith.constant 8.000000e+00 : f32
    %227 = vector.broadcast %cst_73 : f32 to vector<2x32xf32>
    %228 = arith.divf %226, %227 : vector<2x32xf32>
    %c0_74 = arith.constant 0 : index
    %c0_75 = arith.constant 0 : index
    %229 = vector.load %arg9[%c0_74, %c0_75] : memref<1x32xf32, #tpu.memory_space<vmem>>, vector<1x32xf32>
    %c0_76 = arith.constant 0 : index
    %c0_77 = arith.constant 0 : index
    %230 = vector.load %arg10[%c0_76, %c0_77] : memref<1x32xf32, #tpu.memory_space<vmem>>, vector<1x32xf32>
    %cst_78 = arith.constant dense<0.000000e+00> : vector<2xf32>
    %231 = vector.multi_reduction <add>, %228, %cst_78 [1] : vector<2x32xf32> to vector<2xf32>
    %232 = vector.shape_cast %231 : vector<2xf32> to vector<2x1xf32>
    %cst_79 = arith.constant 3.200000e+01 : f32
    %233 = vector.broadcast %cst_79 : f32 to vector<2x1xf32>
    %234 = arith.divf %232, %233 : vector<2x1xf32>
    %235 = vector.broadcast %234 : vector<2x1xf32> to vector<2x32xf32>
    %236 = arith.subf %228, %235 : vector<2x32xf32>
    %237 = arith.mulf %236, %236 : vector<2x32xf32>
    %cst_80 = arith.constant dense<0.000000e+00> : vector<2xf32>
    %238 = vector.multi_reduction <add>, %237, %cst_80 [1] : vector<2x32xf32> to vector<2xf32>
    %239 = vector.shape_cast %238 : vector<2xf32> to vector<2x1xf32>
    %cst_81 = arith.constant 3.200000e+01 : f32
    %240 = vector.broadcast %cst_81 : f32 to vector<2x1xf32>
    %241 = arith.divf %239, %240 : vector<2x1xf32>
    %242 = vector.broadcast %234 : vector<2x1xf32> to vector<2x32xf32>
    %243 = arith.subf %228, %242 : vector<2x32xf32>
    %cst_82 = arith.constant 9.99999974E-6 : f32
    %244 = vector.broadcast %cst_82 : f32 to vector<2x1xf32>
    %245 = arith.addf %241, %244 : vector<2x1xf32>
    %246 = math.rsqrt %245 : vector<2x1xf32>
    %247 = vector.broadcast %246 : vector<2x1xf32> to vector<2x32xf32>
    %248 = arith.mulf %243, %247 : vector<2x32xf32>
    %249 = vector.broadcast %229 : vector<1x32xf32> to vector<2x32xf32>
    %250 = arith.mulf %248, %249 : vector<2x32xf32>
    %251 = vector.broadcast %230 : vector<1x32xf32> to vector<2x32xf32>
    %252 = arith.addf %250, %251 : vector<2x32xf32>
    %cst_83 = arith.constant 0.000000e+00 : f32
    %253 = vector.broadcast %cst_83 : f32 to vector<2x32xf32>
    %254 = arith.maximumf %252, %253 : vector<2x32xf32>
    %c0_84 = arith.constant 0 : index
    %c0_85 = arith.constant 0 : index
    %255 = vector.load %arg11[%c0_84, %c0_85] : memref<32x4xf32, #tpu.memory_space<vmem>>, vector<32x4xf32>
    %cst_86 = arith.constant dense<0.000000e+00> : vector<2x4xf32>
    %256 = tpu.matmul %254, %255, %cst_86 {dimension_numbers = #tpu.dot_dimension_numbers<[1], [0], [0], [1], [0, 0, 1, 1], [], []>} : vector<2x32xf32>, vector<32x4xf32>, vector<2x4xf32> -> vector<2x4xf32>
    %c0_87 = arith.constant 0 : index
    %c0_88 = arith.constant 0 : index
    %257 = vector.load %arg12[%c0_87, %c0_88] : memref<1x4xf32, #tpu.memory_space<vmem>>, vector<1x4xf32>
    %258 = vector.broadcast %257 : vector<1x4xf32> to vector<2x4xf32>
    %259 = arith.addf %256, %258 : vector<2x4xf32>
    %c0_89 = arith.constant 0 : index
    %c0_90 = arith.constant 0 : index
    %260 = vector.load %arg13[%c0_89, %c0_90] : memref<2x4xf32, #tpu.memory_space<vmem>>, vector<2x4xf32>
    tpu.vector_store %arg13[%c0_89, %c0_90], %259 {strides = array<i32>} : memref<2x4xf32, #tpu.memory_space<vmem>>, vector<2x4xf32>,
    return
  }
}

</mosaic_0001>

<bundles_post_ra>
// kernel: transformer_forward.1
= control target key start
LH: loop header
LB: loop body
LE: loop exit
PB: predicated region body
PF: predicated region fallthrough
CT: control target
= control target key end

     0   :  { %18 = vsyncpa [#allocation3], 0  ;;  %s3852_s0 = inlined_call_operand.vmem [shape: f32[16,32], index: 0, kind: input, shape index: {}]   ;;  %s3853_s1 = inlined_call_operand.vmem [shape: f32[2,32,96], index: 1, kind: input, shape index: {}]   ;;  %s3854_s2 = inlined_call_operand.vmem [shape: f32[2,1,96], index: 2, kind: input, shape index: {}]   ;;  %s3855_s3 = inlined_call_operand.hbm [shape: f32[2,32,32], index: 3, kind: input, shape index: {}]   ;;  %s3856_s4 = inlined_call_operand.vmem [shape: f32[2,1,32], index: 4, kind: input, shape index: {}]   ;;  %s3857_s5 = inlined_call_operand.vmem [shape: f32[1,1,32], index: 5, kind: input, shape index: {}]   ;;  %s3858_s6 = inlined_call_operand.hbm [shape: f32[1,1,32], index: 6, kind: input, shape index: {}]   ;;  %s3859_s7 = inlined_call_operand.hbm [shape: f32[2,1,32], index: 7, kind: input, shape index: {}]   ;;  %s3860_s8 = inlined_call_operand.hbm [shape: f32[2,1,32], index: 8, kind: input, shape index: {}]   ;;  %s3861_s9 = inlined_call_operand.hbm [shape: f32[1,32], index: 9, kind: input, shape index: {}]   ;;  %s3862_s10 = inlined_call_operand.hbm [shape: f32[1,32], index: 10, kind: input, shape index: {}]   ;;  %s3863_s11 = inlined_call_operand.vmem [shape: f32[32,4], index: 11, kind: input, shape index: {}]   ;;  %s3864_s12 = inlined_call_operand.hbm [shape: f32[1,4], index: 12, kind: input, shape index: {}]   ;;  %s3865_s13 = inlined_call_operand.hbm [shape: f32[2,4], index: 13, kind: output, shape index: {}]  }
   0x1   :  { %19 = vsyncpa [#allocation6], 0 }
   0x2   :  { %20 = vsyncpa [#allocation9], 0 }
   0x3   :  { %21 = vsyncpa [#allocation12], 0 }
   0x4   :  { %22 = vsyncpa [#allocation4], 0  ;;  %s3322_s25 = smov [#allocation5]   ;;  %s3136_s29 = scalar_lea.hbm %s3858_s6, 16 }
   0x5   :  { %s51_s26 = sshll.u32 %s3322_s25, 4  ;;  %p3137_p0 = scmp.ne.s32.totalorder %s3858_s6, %s3136_s29  ;;  %s52_s26 = int_to_ptr.vmem [resolvable:$true] %s51_s26 }
   0x6   :  { %p3140_p1 = scmp.lt.u32.totalorder %s3136_s29, %s3858_s6 }
   0x8   :  { %p3142_p2 = pnand %p3140_p1, %p3137_p0 }
   0xa   :  { %3145 = shalt.err (!%p3142_p2)
}
   0xb   :  { %s3146_s17 = scalar_lea.vmem %s52_s26, 16  ;;  %s3150_s18 = scalar_lea.vmem %s52_s26, 32 }
   0xc   :  { %p3147_p3 = scmp.ne.s32.totalorder %s52_s26, %s3146_s17  ;;  %p3151_p4 = scmp.lt.s32.totalorder %s52_s26, %s52_s26 }
   0xd   :  { %p3152_p5 = scmp.lt.s32.totalorder %s3150_s18, %s3146_s17 }
   0xf   :  { %p3153_p6 = por %p3152_p5, %p3151_p4 }
  0x11   :  { %p3154_p7 = pnand %p3153_p6, %p3147_p3 }
  0x13   :  { %3157 = shalt.err (!%p3154_p7)
}
  0x14   :  { %54 = dma.hbm_to_vmem [thread:$0]  %s3858_s6, 16, %s52_s26, [#allocation6]  }
  0x15   :  { %s3323_s21 = smov [#allocation8]   ;;  %s3324_s23 = smov [#allocation11]  }
  0x16   :  { %s72_s22 = sshll.u32 %s3323_s21, 4  ;;  %s95_s24 = sshll.u32 %s3324_s23, 4  ;;  %s73_s22 = int_to_ptr.vmem [resolvable:$true] %s72_s22  ;;  %s96_s24 = int_to_ptr.vmem [resolvable:$true] %s95_s24 }
  0x17   :  { %s3158_s28 = scalar_lea.hbm %s3860_s8, 32 }
  0x18   :  { %p3159_p8 = scmp.ne.s32.totalorder %s3860_s8, %s3158_s28  ;;  %p3162_p9 = scmp.lt.u32.totalorder %s3158_s28, %s3860_s8 }
  0x1a   :  { %p3164_p10 = pnand %p3162_p9, %p3159_p8 }
  0x1c   :  { %3167 = shalt.err (!%p3164_p10)
}
  0x1d   :  { %s3168_s6 = scalar_lea.vmem %s73_s22, 32  ;;  %p3173_p12 = scmp.lt.s32.totalorder %s73_s22, %s73_s22 }
  0x1e   :  { %p3169_p11 = scmp.ne.s32.totalorder %s73_s22, %s3168_s6  ;;  %p3174_p13 = scmp.lt.s32.totalorder %s3168_s6, %s3168_s6 }
  0x20   :  { %p3175_p0 = por %p3174_p13, %p3173_p12 }
  0x22   :  { %p3176_p1 = pnand %p3175_p0, %p3169_p11 }
  0x24   :  { %3179 = shalt.err (!%p3176_p1)
}
  0x25   :  { %s3325_s26 = smov 16   ;;  %s3326_s16 = smov 1  }
  0x26   :  { %78 = dma.hbm_to_vmem [thread:$0]  %s3860_s8, 32, %s73_s22, [#allocation9], %s3325_s26, %s3325_s26, %s3326_s16  }
  0x27   :  { %s3180_s21 = scalar_lea.hbm %s3862_s10, 16 }
  0x28   :  { %p3181_p2 = scmp.ne.s32.totalorder %s3862_s10, %s3180_s21  ;;  %p3184_p3 = scmp.lt.u32.totalorder %s3180_s21, %s3862_s10 }
  0x2a   :  { %p3186_p4 = pnand %p3184_p3, %p3181_p2 }
  0x2c   :  { %3189 = shalt.err (!%p3186_p4)
}
  0x2d   :  { %s3190_s29 = scalar_lea.vmem %s96_s24, 16  ;;  %s3194_s30 = scalar_lea.vmem %s96_s24, 32 }
  0x2e   :  { %p3191_p5 = scmp.ne.s32.totalorder %s96_s24, %s3190_s29  ;;  %p3195_p6 = scmp.lt.s32.totalorder %s96_s24, %s96_s24 }
  0x2f   :  { %p3196_p7 = scmp.lt.s32.totalorder %s3194_s30, %s3190_s29 }
  0x31   :  { %p3197_p8 = por %p3196_p7, %p3195_p6 }
  0x33   :  { %p3198_p9 = pnand %p3197_p8, %p3191_p5 }
  0x35   :  { %3201 = shalt.err (!%p3198_p9)
}
  0x36   :  { %98 = dma.hbm_to_vmem [thread:$0]  %s3862_s10, 16, %s96_s24, [#allocation12]  }
  0x37   :  { %s3327_s14 = smov [#allocation2]   ;;  %s3202_s18 = scalar_lea.hbm %s3855_s3, 1024 }
  0x38   :  { %s34_s15 = sshll.u32 %s3327_s14, 4  ;;  %p3203_p10 = scmp.ne.s32.totalorder %s3855_s3, %s3202_s18  ;;  %s35_s15 = int_to_ptr.vmem [resolvable:$true] %s34_s15 }
  0x39   :  { %p3206_p11 = scmp.lt.u32.totalorder %s3202_s18, %s3855_s3 }
  0x3b   :  { %p3208_p12 = pnand %p3206_p11, %p3203_p10 }
  0x3d   :  { %3211 = shalt.err (!%p3208_p12)
}
  0x3e   :  { %s3212_s25 = scalar_lea.vmem %s35_s15, 1024  ;;  %p3217_p0 = scmp.lt.s32.totalorder %s35_s15, %s35_s15 }
  0x3f   :  { %p3213_p13 = scmp.ne.s32.totalorder %s35_s15, %s3212_s25  ;;  %p3218_p1 = scmp.lt.s32.totalorder %s3212_s25, %s3212_s25 }
  0x41   :  { %p3219_p2 = por %p3218_p1, %p3217_p0 }
  0x43   :  { %p3220_p3 = pnand %p3219_p2, %p3213_p13 }
  0x45   :  { %3223 = shalt.err (!%p3220_p3)
}
  0x46   :  { %s3328_s10 = smov 128   ;;  %s3329_s24 = smov 8  }
  0x47   :  { %40 = dma.hbm_to_vmem [thread:$0]  %s3855_s3, 1024, %s35_s15, [#allocation3], %s3328_s10, %s3328_s10, %s3329_s24  }
  0x48   :  { %s3330_s29 = smov [#allocation7]   ;;  %s3331_s8 = smov [#allocation10]  }
  0x49   :  { %s60_s30 = sshll.u32 %s3330_s29, 4  ;;  %s85_s22 = sshll.u32 %s3331_s8, 4  ;;  %s61_s30 = int_to_ptr.vmem [resolvable:$true] %s60_s30  ;;  %s86_s22 = int_to_ptr.vmem [resolvable:$true] %s85_s22 }
  0x4a   :  { %s3224_s17 = scalar_lea.hbm %s3859_s7, 32 }
  0x4b   :  { %p3225_p4 = scmp.ne.s32.totalorder %s3859_s7, %s3224_s17  ;;  %p3228_p5 = scmp.lt.u32.totalorder %s3224_s17, %s3859_s7 }
  0x4d   :  { %p3230_p6 = pnand %p3228_p5, %p3225_p4 }
  0x4f   :  { %3233 = shalt.err (!%p3230_p6)
}
  0x50   :  { %s3234_s3 = scalar_lea.vmem %s61_s30, 32  ;;  %p3239_p8 = scmp.lt.s32.totalorder %s61_s30, %s61_s30 }
  0x51   :  { %p3235_p7 = scmp.ne.s32.totalorder %s61_s30, %s3234_s3  ;;  %p3240_p9 = scmp.lt.s32.totalorder %s3234_s3, %s3234_s3 }
  0x53   :  { %p3241_p10 = por %p3240_p9, %p3239_p8 }
  0x55   :  { %p3242_p11 = pnand %p3241_p10, %p3235_p7 }
  0x57   :  { %3245 = shalt.err (!%p3242_p11)
}
  0x58   :  { %66 = dma.hbm_to_vmem [thread:$0]  %s3859_s7, 32, %s61_s30, [#allocation6], %s3325_s26, %s3325_s26, %s3326_s16  }
  0x59   :  { %s3246_s27 = scalar_lea.hbm %s3861_s9, 16 }
  0x5a   :  { %p3247_p12 = scmp.ne.s32.totalorder %s3861_s9, %s3246_s27  ;;  %p3250_p13 = scmp.lt.u32.totalorder %s3246_s27, %s3861_s9 }
  0x5c   :  { %p3252_p0 = pnand %p3250_p13, %p3247_p12 }
  0x5e   :  { %3255 = shalt.err (!%p3252_p0)
}
  0x5f   :  { %s3256_s6 = scalar_lea.vmem %s86_s22, 16  ;;  %s3260_s17 = scalar_lea.vmem %s86_s22, 32 }
  0x60   :  { %p3257_p1 = scmp.ne.s32.totalorder %s86_s22, %s3256_s6  ;;  %p3261_p2 = scmp.lt.s32.totalorder %s86_s22, %s86_s22 }
  0x61   :  { %p3262_p3 = scmp.lt.s32.totalorder %s3260_s17, %s3256_s6 }
  0x63   :  { %p3263_p4 = por %p3262_p3, %p3261_p2 }
  0x65   :  { %p3264_p5 = pnand %p3263_p4, %p3257_p1 }
  0x67   :  { %3267 = shalt.err (!%p3264_p5)
}
  0x68   :  { %88 = dma.hbm_to_vmem [thread:$0]  %s3861_s9, 16, %s86_s22, [#allocation9]  }
  0x69   :  { %s3332_s30 = smov [#allocation13]   ;;  %s3268_s21 = scalar_lea.hbm %s3864_s12, 16 }
  0x6a   :  { %s107_s18 = sshll.u32 %s3332_s30, 4  ;;  %p3269_p6 = scmp.ne.s32.totalorder %s3864_s12, %s3268_s21  ;;  %s108_s18 = int_to_ptr.vmem [resolvable:$true] %s107_s18 }
  0x6b   :  { %p3272_p7 = scmp.lt.u32.totalorder %s3268_s21, %s3864_s12 }
  0x6d   :  { %p3274_p8 = pnand %p3272_p7, %p3269_p6 }
  0x6f   :  { %3277 = shalt.err (!%p3274_p8)
}
  0x70   :  { %s3278_s10 = scalar_lea.vmem %s108_s18, 16  ;;  %s3282_s9 = scalar_lea.vmem %s108_s18, 32 }
  0x71   :  { %p3279_p9 = scmp.ne.s32.totalorder %s108_s18, %s3278_s10  ;;  %p3283_p10 = scmp.lt.s32.totalorder %s108_s18, %s108_s18 }
  0x72   :  { %p3284_p11 = scmp.lt.s32.totalorder %s3282_s9, %s3278_s10 }
  0x74   :  { %p3285_p12 = por %p3284_p11, %p3283_p10 }
  0x76   :  { %p3286_p13 = pnand %p3285_p12, %p3279_p9 }
  0x78   :  { %3289 = shalt.err (!%p3286_p13)
}
  0x79   :  { %110 = dma.hbm_to_vmem [thread:$0]  %s3864_s12, 16, %s108_s18, [#allocation12]  }
  0x7a   :  { %3312 = dma.done.wait [#allocation3], 1024  }
  0x7b   :  { %3313 = vsyncadd [#allocation3], 4294966272 }
  0x7c   :  { %3314 = dma.done.wait [#allocation6], 48  }
  0x7d   :  { %3315 = vsyncadd [#allocation6], 4294967248 }
  0x7e   :  { %3316 = dma.done.wait [#allocation9], 48  }
  0x7f   :  { %3317 = vsyncadd [#allocation9], 4294967248 }
  0x80   :  { %3318 = dma.done.wait [#allocation12], 32  }
  0x81   :  { %3319 = vsyncadd [#allocation12], 4294967264  ;;  %vm163_vm0 = vcmask 261120   ;;  %v152_v0 = vld [vmem:[%s3853_s1] sm:$0xff]  ;;  %v153_v1 = vld [vmem:[%s3853_s1 + $0x8] sm:$0xff]  ;;  %vm263_vm1 = vcmask 64512   ;;  %v134_v40 = vlaneseq }
  0x82   :  { %v154_v2 = vld [vmem:[%s3853_s1 + $0x10] sm:$0xff]  ;;  %v2838_v3 = vpack.c.bf16 %v153_v1, %v152_v0  ;;  %v155_v4 = vld [vmem:[%s3853_s1 + $0x18] sm:$0xff]  ;;  %v3520_v5 = vld [vmem:[%s3852_s0] sm:$0xff]  ;;  %s3333_s3 = smov 112   ;;  %s3334_s15 = smov 120   ;;  %vm608_vm5 = vcmask 130048  }
  0x83   :  { %v2842_v6 = vpack.c.bf16 %v155_v4, %v154_v2  ;;  %2679 = vmatprep.mubr.msk.f32.mxu0 %vm163_vm0, %v3520_v5  ;;  %v3527_v7 = vld [vmem:[%s3852_s0 + $0x8] sm:$0xff]  ;;  %v2502_v8 = vld [vmem:[%s3854_s2] ss:$0 sm:$0xff]  ;;  %s3335_s0 = smov 104   ;;  %s3336_s23 = smov 96   ;;  %vm3560_vm2 = vmpackc.low %vm263_vm1, %vm263_vm1  ;;  %v135_v41 = vshrl.u32 %v134_v40, 7 }
  0x84   :  { %2839 = vmatprep.subr.bf16.mxu0 %v2838_v3  ;;  %v140_v43 = vand.u32 127, %v134_v40  ;;  %v3337_v53 = vmov -1e+30   ;;  %s3338_s25 = smov 64   ;;  %s3339_s10 = smov 24   ;;  %vm1073_vm6 = vcmask 195584  }
  0x85   :  { %2841 = vmatpush3.bf16.msra.mxu0 %v2838_v3  ;;  %v136_v42 = vadd.s32 8, %v135_v41  ;;  %v137_v46 = vcvt.s32.f32 %v135_v41  ;;  %vm2344_vm7 = vcmask 1041409   ;;  %vm2347_vm8 = vcmask 254976  }
  0x86   :  { %2843 = vmatprep.subr.bf16.mxu0 %v2842_v6  ;;  %v141_v45 = vcvt.s32.f32 %v140_v43  ;;  %vm3341_vm9 = vmmov 0   ;;  %vm2482_vm10 = vcmask 25600  }
  0x87   :  { %v138_v44 = vcvt.s32.f32 %v136_v42  ;;  %v142_v49 = vmul.f32 0.125, %v137_v46 }
  0x88   :  { %v146_v48 = vmul.f32 0.125, %v141_v45 }
  0x89   :  { %2845 = vmatpush3.bf16.msra.mxu0 %v2842_v6  ;;  %v143_v47 = vmul.f32 0.125, %v138_v44  ;;  %v144_v52 = vfloor.f32 %v142_v49 }
  0x8a   :  { %v147_v51 = vfloor.f32 %v146_v48 }
  0x8b   :  { %v145_v50 = vfloor.f32 %v143_v47 }
  0x8c   :  { %2680 = vmatmul.mubr.msk.f32.vlgmr.msra.gmra.mrb[0].mxu0 %vm163_vm0, %v3527_v7  ;;  %vm148_vm4 = vcmp.eq.f32.partialorder %v144_v52, %v147_v51 }
  0x8d   :  { %vm149_vm3 = vcmp.eq.f32.partialorder %v145_v50, %v147_v51  ;;  %v3588_v55 = vsel %vm148_vm4, 0.0, %v3337_v53 }
  0x8e   :  { %v3586_v54 = vsel %vm149_vm3, 0.0, %v3337_v53 }
 0x15f   :  { %v2681_v9 = vpop.f32.mrb[0].mxu0 }
 0x160   :  { %v242_v10 = vadd.f32 %v2681_v9, %v2502_v8  ;;  %v236_v11 = vpop.f32.mrb[1].mxu0 }
 0x161   :  { %v237_v12 = vadd.f32 %v2502_v8, %v236_v11 }
 0x162   :  { %253 = vrot.lane.b32.xlu1 %v242_v10, %s3333_s3 }
 0x163   :  { %247 = vrot.lane.b32.xlu0 %v237_v12, %s3334_s15  ;;  %2686 = vmatprep.mubr.msk.f32.mxu1 %vm263_vm1, %v237_v12  ;;  %v3541_v13 = vpack.i.bf16 %v242_v10, %v237_v12 }
 0x166   :  { %251 = vrot.lane.b32.xlu1 %v237_v12, %s3333_s3 }
 0x167   :  { %249 = vrot.lane.b32.xlu0 %v242_v10, %s3334_s15 }
 0x16a   :  { %257 = vrot.lane.b32.xlu1 %v242_v10, %s3335_s0 }
 0x16b   :  { %255 = vrot.lane.b32.xlu0 %v237_v12, %s3335_s0 }
 0x16f   :  { %2979 = vrot.lane.b32.xlu0 %v3541_v13, %s3336_s23 }
 0x1d4   :  { %v254_v14 = vpop.permute.xlu1 %253 }
 0x1d5   :  { %v248_v15 = vpop.permute.xlu0 %247 }
 0x1d6   :  { %2693 = vmatprep.mubr.msk.f32.mxu0 %vm263_vm1, %v248_v15 }
 0x1d8   :  { %v252_v16 = vpop.permute.xlu1 %251 }
 0x1d9   :  { %v3546_v17 = vpack.i.bf16 %v254_v14, %v252_v16  ;;  %v250_v18 = vpop.permute.xlu0 %249 }
 0x1da   :  { %v3548_v19 = vpack.i.bf16 %v250_v18, %v248_v15 }
 0x1db   :  { %2989 = vrot.lane.b32.xlu0 %v3546_v17, %s3336_s23 }
 0x1dc   :  { %v258_v20 = vpop.permute.xlu1 %257  ;;  %2984 = vrot.lane.b32.xlu1 %v3548_v19, %s3336_s23 }
 0x1dd   :  { %v256_v21 = vpop.permute.xlu0 %255 }
 0x1de   :  { %v3554_v22 = vpack.i.bf16 %v258_v20, %v256_v21 }
 0x1e0   :  { %2994 = vrot.lane.b32.xlu1 %v3554_v22, %s3336_s23 }
 0x1e1   :  { %v2980_v23 = vpop.permute.xlu0 %2979 }
 0x1e2   :  { %v2982_v24 = vunpack.i.h.bf16 %v2980_v23  ;;  %v2981_v25 = vunpack.i.l.bf16 %v2980_v23 }
 0x1e4   :  { %v2846_v27 = vpack.c.bf16 %v2982_v24, %v2981_v25 }
 0x1e6   :  { %2848 = vmatprep.subr.msk.bf16.mxu1 %vm3560_vm2, %v2846_v27 }
 0x1e7   :  { %2851 = vmatpush3.bf16.xpose.msk.msra.mxu1 %vm3560_vm2, %v2846_v27 }
 0x1ee   :  { %2687 = vmatmul.mubr.msk.f32.vlgmr.msra.gmra.mrb[0].mxu1 %vm263_vm1, %v242_v10 }
 0x1ef   :  { %2700 = vmatprep.mubr.msk.f32.mxu1 %vm263_vm1, %v252_v16 }
 0x24d   :  { %v2990_v28 = vpop.permute.xlu0 %2989 }
 0x24e   :  { %v2992_v29 = vunpack.i.h.bf16 %v2990_v28  ;;  %v2991_v30 = vunpack.i.l.bf16 %v2990_v28  ;;  %v2985_v31 = vpop.permute.xlu1 %2984 }
 0x24f   :  { %v2987_v32 = vunpack.i.h.bf16 %v2985_v31  ;;  %v2986_v33 = vunpack.i.l.bf16 %v2985_v31 }
 0x250   :  { %v2858_v34 = vpack.c.bf16 %v2992_v29, %v2991_v30 }
 0x251   :  { %v2852_v35 = vpack.c.bf16 %v2987_v32, %v2986_v33 }
 0x252   :  { %v2995_v36 = vpop.permute.xlu1 %2994  ;;  %2860 = vmatprep.subr.msk.bf16.mxu1 %vm3560_vm2, %v2858_v34 }
 0x253   :  { %v2997_v37 = vunpack.i.h.bf16 %v2995_v36  ;;  %v2996_v38 = vunpack.i.l.bf16 %v2995_v36  ;;  %2854 = vmatprep.subr.msk.bf16.mxu0 %vm3560_vm2, %v2852_v35  ;;  %2863 = vmatpush3.bf16.xpose.msk.msra.mxu1 %vm3560_vm2, %v2858_v34 }
 0x254   :  { %2857 = vmatpush3.bf16.xpose.msk.msra.mxu0 %vm3560_vm2, %v2852_v35 }
 0x255   :  { %v2864_v39 = vpack.c.bf16 %v2997_v37, %v2996_v38 }
 0x257   :  { %2866 = vmatprep.subr.msk.bf16.mxu0 %vm3560_vm2, %v2864_v39 }
 0x25a   :  { %2701 = vmatmul.mubr.msk.f32.vlgmr.msra.gmra.mrb[2].mxu1 %vm263_vm1, %v254_v14 }
 0x25b   :  { %2694 = vmatmul.mubr.msk.f32.vlgmr.msra.gmra.mrb[2].mxu0 %vm263_vm1, %v250_v18 }
 0x25c   :  { %2869 = vmatpush3.bf16.xpose.msk.msra.mxu0 %vm3560_vm2, %v2864_v39  ;;  %2707 = vmatprep.mubr.msk.f32.mxu0 %vm263_vm1, %v256_v21 }
 0x263   :  { %2708 = vmatmul.mubr.msk.f32.vlgmr.msra.gmra.mrb[4].mxu0 %vm263_vm1, %v258_v20 }
 0x2c1   :  { %v2688_v56 = vpop.f32.mrb[0].mxu1 }
 0x2c2   :  { %v344_v57 = vadd.f32 %v2688_v56, %v3586_v54  ;;  %v338_v58 = vpop.f32.mrb[1].mxu1 }
 0x2c3   :  { %v339_v59 = vadd.f32 %v338_v58, %v3588_v55 }
 0x2c4   :  { %v612_v60 = vsel %vm608_vm5, %v344_v57, -inf }
 0x2c5   :  { %613 = vmax.xlane.f32.xlu1 %v612_v60  ;;  %v609_v61 = vsel %vm608_vm5, %v339_v59, -inf }
 0x2c6   :  { %610 = vmax.xlane.f32.xlu0 %v609_v61 }
 0x32d   :  { %v2702_v62 = vpop.f32.mrb[2].mxu1 }
 0x32e   :  { %v2695_v63 = vpop.f32.mrb[2].mxu0  ;;  %v512_v0 = vpop.f32.mrb[3].mxu1  ;;  %v518_v9 = vadd.f32 %v2702_v62, %v3586_v54 }
 0x32f   :  { %v431_v1 = vadd.f32 %v2695_v63, %v3586_v54  ;;  %v513_v2 = vadd.f32 %v512_v0, %v3588_v55  ;;  %v425_v3 = vpop.f32.mrb[3].mxu0 }
 0x330   :  { %v426_v4 = vadd.f32 %v425_v3, %v3588_v55  ;;  %v624_v16 = vsel %vm608_vm5, %v518_v9, -inf }
 0x331   :  { %v621_v6 = vsel %vm608_vm5, %v513_v2, -inf  ;;  %v618_v8 = vsel %vm608_vm5, %v431_v1, -inf }
 0x332   :  { %622 = vmax.xlane.f32.xlu1 %v621_v6  ;;  %619 = vmax.xlane.f32.xlu0 %v618_v8  ;;  %v615_v10 = vsel %vm608_vm5, %v426_v4, -inf }
 0x336   :  { %v2709_v11 = vpop.f32.mrb[4].mxu0  ;;  %616 = vmax.xlane.f32.xlu0 %v615_v10 }
 0x337   :  { %v599_v12 = vpop.f32.mrb[5].mxu0  ;;  %v605_v15 = vadd.f32 %v2709_v11, %v3586_v54 }
 0x338   :  { %v3602_v14 = vadd.f32 %v599_v12, %v3588_v55 }
 0x339   :  { %v630_v20 = vsel %vm608_vm5, %v605_v15, -inf }
 0x33a   :  { %625 = vmax.xlane.f32.xlu0 %v624_v16  ;;  %v627_v18 = vsel %vm608_vm5, %v3602_v14, -inf }
 0x33b   :  { %628 = vmax.xlane.f32.xlu1 %v627_v18 }
 0x33e   :  { %631 = vmax.xlane.f32.xlu0 %v630_v20 }
 0x34c   :  { %2999 = vrot.lane.b32.xlu1 %v3541_v13, %s3338_s25 }
 0x352   :  { %v614_v21 = vpop.xlane.xlu1 %613 }
 0x353   :  { %v634_v23 = vsub.f32 %v344_v57, %v614_v21  ;;  %v611_v25 = vpop.xlane.xlu0 %610 }
 0x354   :  { %v633_v27 = vsub.f32 %v339_v59, %v611_v25 }
 0x355   :  { %v643_v24 = vmul.f32 1.442695, %v634_v23 }
 0x356   :  { %v641_v28 = vmul.f32 1.442695, %v633_v27 }
 0x357   :  { %3058 = vpow2.f32 %v643_v24 }
 0x358   :  { %3060 = vpow2.f32 %v641_v28 }
 0x361   :  { %v3059_v29 = vpop.eup %3058 }
 0x362   :  { %v660_v30 = vsel %vm608_vm5, %v3059_v29, 0.0  ;;  %v3061_v31 = vpop.eup %3060 }
 0x363   :  { %661 = vadd.xlane.f32.xlu0 %v660_v30  ;;  %v657_v32 = vsel %vm608_vm5, %v3061_v31, 0.0 }
 0x370   :  { %658 = vadd.xlane.f32.xlu1 %v657_v32 }
 0x3bf   :  { %v623_v33 = vpop.xlane.xlu1 %622  ;;  %v620_v34 = vpop.xlane.xlu0 %619 }
 0x3c0   :  { %v636_v35 = vsub.f32 %v431_v1, %v620_v34  ;;  %v637_v13 = vsub.f32 %v513_v2, %v623_v33 }
 0x3c2   :  { %v647_v36 = vmul.f32 1.442695, %v636_v35  ;;  %v649_v39 = vmul.f32 1.442695, %v637_v13 }
 0x3c3   :  { %v617_v37 = vpop.xlane.xlu0 %616 }
 0x3c4   :  { %v635_v38 = vsub.f32 %v426_v4, %v617_v37  ;;  %3062 = vpow2.f32 %v647_v36 }
 0x3c6   :  { %v645_v40 = vmul.f32 1.442695, %v635_v38 }
 0x3c7   :  { %v626_v41 = vpop.xlane.xlu0 %625 }
 0x3c8   :  { %3064 = vpow2.f32 %v645_v40  ;;  %v638_v42 = vsub.f32 %v518_v9, %v626_v41  ;;  %v629_v43 = vpop.xlane.xlu1 %628 }
 0x3c9   :  { %3066 = vpow2.f32 %v649_v39  ;;  %v639_v0 = vsub.f32 %v3602_v14, %v629_v43 }
 0x3ca   :  { %v651_v44 = vmul.f32 1.442695, %v638_v42 }
 0x3cb   :  { %v632_v45 = vpop.xlane.xlu0 %631  ;;  %v653_v2 = vmul.f32 1.442695, %v639_v0 }
 0x3cc   :  { %3068 = vpow2.f32 %v651_v44  ;;  %v640_v46 = vsub.f32 %v605_v15, %v632_v45  ;;  %v3000_v47 = vpop.permute.xlu1 %2999  ;;  %v1076_v45 = vld [vmem:[#allocation2] sm:$0xff] }
 0x3cd   :  { %v3002_v48 = vunpack.i.h.bf16 %v3000_v47  ;;  %v3001_v49 = vunpack.i.l.bf16 %v3000_v47  ;;  %v1078_v47 = vld [vmem:[#allocation2 + $0x10] sm:$0xff] }
 0x3ce   :  { %v655_v50 = vmul.f32 1.442695, %v640_v46  ;;  %v3613_v51 = vpop.eup %3062  ;;  %v1077_v46 = vld [vmem:[#allocation2 + $0x8] sm:$0xff] }
 0x3cf   :  { %v2870_v52 = vpack.c.bf16 %v3002_v48, %v3001_v49  ;;  %v666_v53 = vsel %vm608_vm5, %v3613_v51, 0.0  ;;  %v2886_v48 = vpack.c.bf16 %v1077_v46, %v1076_v45  ;;  %v1079_v49 = vld [vmem:[#allocation2 + $0x18] sm:$0xff] }
 0x3d0   :  { %3070 = vpow2.f32 %v655_v50  ;;  %667 = vadd.xlane.f32.xlu0 %v666_v53  ;;  %v2890_v50 = vpack.c.bf16 %v1079_v49, %v1078_v47 }
 0x3d1   :  { %2871 = vmatprep.subr.bf16.mxu1 %v2870_v52 }
 0x3d2   :  { %v3065_v56 = vpop.eup %3064  ;;  %2873 = vmatpush3.bf16.msra.mxu1 %v2870_v52 }
 0x3d3   :  { %v663_v57 = vsel %vm608_vm5, %v3065_v56, 0.0  ;;  %v3067_v58 = vpop.eup %3066 }
 0x3d4   :  { %664 = vadd.xlane.f32.xlu1 %v663_v57  ;;  %v669_v60 = vsel %vm608_vm5, %v3067_v58, 0.0 }
 0x3d6   :  { %v3069_v59 = vpop.eup %3068 }
 0x3d7   :  { %v672_v61 = vsel %vm608_vm5, %v3069_v59, 0.0 }
 0x3d8   :  { %670 = vadd.xlane.f32.xlu1 %v669_v60  ;;  %673 = vadd.xlane.f32.xlu0 %v672_v61 }
 0x3da   :  { %v3620_v62 = vpop.eup %3070 }
 0x3db   :  { %v678_v63 = vsel %vm608_vm5, %v3620_v62, 0.0 }
 0x3dc   :  { %679 = vadd.xlane.f32.xlu0 %v678_v63 }
 0x3e9   :  { %3009 = vrot.lane.b32.xlu1 %v3546_v17, %s3338_s25 }
 0x3f0   :  { %v662_v1 = vpop.xlane.xlu0 %661 }
 0x3f1   :  { %3072 = vrcp.f32 %v662_v1 }
 0x3f2   :  { %3004 = vrot.lane.b32.xlu0 %v3548_v19, %s3338_s25 }
 0x3fb   :  { %v3073_v4 = vpop.eup %3072 }
 0x3fc   :  { %v690_v10 = vmul.f32 %v3073_v4, %v3059_v29 }
 0x3fd   :  { %v659_v3 = vpop.xlane.xlu1 %658 }
 0x3fe   :  { %3074 = vrcp.f32 %v659_v3 }
 0x3ff   :  { %3076 = vpow2.f32 %v653_v2 }
 0x408   :  { %v3075_v6 = vpop.eup %3074 }
 0x409   :  { %v3077_v8 = vpop.eup %3076  ;;  %v689_v9 = vmul.f32 %v3075_v6, %v3061_v31 }
 0x40a   :  { %v675_v17 = vsel %vm608_vm5, %v3077_v8, 0.0 }
 0x40b   :  { %2714 = vmatprep.mubr.msk.f32.mxu1 %vm608_vm5, %v689_v9  ;;  %v2529_v9 = vld [vmem:[%s3856_s4] ss:$0 sm:$0xff] }
 0x40c   :  { %2715 = vmatmul.mubr.msk.f32.vlgmr.msra.gmra.mrb[4].mxu1 %vm608_vm5, %v690_v10 }
 0x40d   :  { %676 = vadd.xlane.f32.xlu1 %v675_v17 }
 0x41e   :  { %3014 = vrot.lane.b32.xlu1 %v3554_v22, %s3338_s25 }
 0x45d   :  { %v668_v19 = vpop.xlane.xlu0 %667 }
 0x461   :  { %v665_v11 = vpop.xlane.xlu1 %664 }
 0x462   :  { %3078 = vrcp.f32 %v665_v11 }
 0x463   :  { %3080 = vrcp.f32 %v668_v19 }
 0x465   :  { %v671_v12 = vpop.xlane.xlu1 %670  ;;  %v674_v14 = vpop.xlane.xlu0 %673 }
 0x466   :  { %3082 = vrcp.f32 %v671_v12 }
 0x467   :  { %3084 = vrcp.f32 %v674_v14 }
 0x469   :  { %v3010_v15 = vpop.permute.xlu1 %3009  ;;  %v680_v16 = vpop.xlane.xlu0 %679 }
 0x46a   :  { %v3012_v18 = vunpack.i.h.bf16 %v3010_v15  ;;  %v3011_v20 = vunpack.i.l.bf16 %v3010_v15  ;;  %3086 = vrcp.f32 %v680_v16 }
 0x46c   :  { %v3079_v21 = vpop.eup %3078  ;;  %v2878_v23 = vpack.c.bf16 %v3012_v18, %v3011_v20 }
 0x46d   :  { %v3005_v24 = vpop.permute.xlu0 %3004  ;;  %v691_v25 = vmul.f32 %v3079_v21, %v3065_v56  ;;  %v3081_v22 = vpop.eup %3080 }
 0x46e   :  { %v3007_v27 = vunpack.i.h.bf16 %v3005_v24  ;;  %v3006_v28 = vunpack.i.l.bf16 %v3005_v24  ;;  %2879 = vmatprep.subr.bf16.mxu0 %v2878_v23  ;;  %v692_v34 = vmul.f32 %v3081_v22, %v3613_v51 }
 0x46f   :  { %2721 = vmatprep.mubr.msk.f32.mxu1 %vm608_vm5, %v691_v25  ;;  %2881 = vmatpush3.bf16.msra.mxu0 %v2878_v23 }
 0x470   :  { %v3083_v29 = vpop.eup %3082  ;;  %v2874_v30 = vpack.c.bf16 %v3007_v27, %v3006_v28  ;;  %2887 = vmatprep.subr.bf16.mxu0 %v2886_v48 }
 0x471   :  { %v3085_v31 = vpop.eup %3084  ;;  %v693_v32 = vmul.f32 %v3083_v29, %v3067_v58 }
 0x472   :  { %v694_v33 = vmul.f32 %v3085_v31, %v3069_v59  ;;  %2875 = vmatprep.subr.bf16.mxu1 %v2874_v30 }
 0x473   :  { %2877 = vmatpush3.bf16.msra.mxu1 %v2874_v30  ;;  %2728 = vmatprep.mubr.msk.f32.mxu0 %vm608_vm5, %v693_v32 }
 0x474   :  { %2729 = vmatmul.mubr.msk.f32.vlgmr.msra.gmra.mrb[6].mxu0 %vm608_vm5, %v694_v33  ;;  %v3087_v39 = vpop.eup %3086 }
 0x475   :  { %v696_v42 = vmul.f32 %v3087_v39, %v3620_v62  ;;  %2889 = vmatpush3.bf16.msra.mxu0 %v2886_v48 }
 0x476   :  { %2722 = vmatmul.mubr.msk.f32.vlgmr.msra.gmra.mrb[6].mxu1 %vm608_vm5, %v692_v34  ;;  %2891 = vmatprep.subr.bf16.mxu0 %v2890_v50 }
 0x479   :  { %2893 = vmatpush3.bf16.msra.mxu0 %v2890_v50 }
 0x49a   :  { %v677_v35 = vpop.xlane.xlu1 %676 }
 0x49b   :  { %3088 = vrcp.f32 %v677_v35  ;;  %v2532_v35 = vld [vmem:[#allocation7] ss:$0 sm:$0xff] }
 0x49e   :  { %v3015_v13 = vpop.permute.xlu1 %3014 }
 0x49f   :  { %v3017_v36 = vunpack.i.h.bf16 %v3015_v13  ;;  %v3016_v37 = vunpack.i.l.bf16 %v3015_v13 }
 0x4a1   :  { %v2882_v38 = vpack.c.bf16 %v3017_v36, %v3016_v37  ;;  %v2533_v36 = vld [vmem:[#allocation8] ss:$0 sm:$0xff] }
 0x4a3   :  { %2883 = vmatprep.subr.bf16.mxu1 %v2882_v38 }
 0x4a4   :  { %2885 = vmatpush3.bf16.msra.mxu1 %v2882_v38 }
 0x4a5   :  { %v3089_v40 = vpop.eup %3088 }
 0x4a6   :  { %v695_v41 = vmul.f32 %v3089_v40, %v3077_v8 }
 0x4a8   :  { %2735 = vmatprep.mubr.msk.f32.mxu1 %vm608_vm5, %v695_v41 }
 0x4a9   :  { %2736 = vmatmul.mubr.msk.f32.vlgmr.msra.gmra.mrb[8].mxu1 %vm608_vm5, %v696_v42 }
 0x4df   :  { %v2716_v43 = vpop.f32.mrb[4].mxu1 }
 0x4e0   :  { %v775_v44 = vpop.f32.mrb[5].mxu1 }
 0x547   :  { %v2730_v51 = vpop.f32.mrb[6].mxu0 }
 0x548   :  { %v949_v52 = vpop.f32.mrb[7].mxu0 }
 0x549   :  { %v2723_v53 = vpop.f32.mrb[6].mxu1 }
 0x54a   :  { %1049 = vrot.lane.b32.xlu1 %v2723_v53, %s3329_s24  ;;  %v862_v56 = vpop.f32.mrb[7].mxu1 }
 0x54b   :  { %1047 = vrot.lane.b32.xlu0 %v862_v56, %s3329_s24 }
 0x54e   :  { %1057 = vrot.lane.b32.xlu1 %v2730_v51, %s3325_s26 }
 0x54f   :  { %1055 = vrot.lane.b32.xlu0 %v949_v52, %s3325_s26 }
 0x57c   :  { %v2737_v57 = vpop.f32.mrb[8].mxu1 }
 0x57d   :  { %1065 = vrot.lane.b32.xlu1 %v2737_v57, %s3339_s10  ;;  %v1036_v58 = vpop.f32.mrb[9].mxu1  ;;  %v2536_v57 = vld [vmem:[%s3853_s1 + $0x20] sm:$0xff] }
 0x57e   :  { %1063 = vrot.lane.b32.xlu0 %v1036_v58, %s3339_s10  ;;  %v2537_v58 = vld [vmem:[%s3853_s1 + $0x28] sm:$0xff] }
 0x5bc   :  { %v1050_v59 = vpop.permute.xlu1 %1049 }
 0x5bd   :  { %v1048_v60 = vpop.permute.xlu0 %1047  ;;  %v1070_v1 = vsel %vm263_vm1, %v2716_v43, %v1050_v59  ;;  %v2894_v59 = vpack.c.bf16 %v2537_v58, %v2536_v57 }
 0x5be   :  { %v1069_v63 = vsel %vm263_vm1, %v775_v44, %v1048_v60  ;;  %v2538_v60 = vld [vmem:[%s3853_s1 + $0x30] sm:$0xff] }
 0x5bf   :  { %2895 = vmatprep.subr.bf16.mxu1 %v2894_v59 }
 0x5c0   :  { %v1058_v61 = vpop.permute.xlu1 %1057  ;;  %2897 = vmatpush3.bf16.msra.mxu1 %v2894_v59 }
 0x5c1   :  { %v1056_v62 = vpop.permute.xlu0 %1055  ;;  %v1072_v4 = vsel %vm608_vm5, %v1070_v1, %v1058_v61  ;;  %v2539_v61 = vld [vmem:[%s3853_s1 + $0x38] sm:$0xff] }
 0x5c2   :  { %v1071_v2 = vsel %vm608_vm5, %v1069_v63, %v1056_v62  ;;  %v2898_v62 = vpack.c.bf16 %v2539_v61, %v2538_v60 }
 0x5c4   :  { %2899 = vmatprep.subr.bf16.mxu1 %v2898_v62 }
 0x5c5   :  { %2901 = vmatpush3.bf16.msra.mxu1 %v2898_v62 }
 0x5ef   :  { %v1066_v0 = vpop.permute.xlu1 %1065 }
 0x5f0   :  { %v1064_v3 = vpop.permute.xlu0 %1063  ;;  %v1075_v8 = vsel %vm1073_vm6, %v1072_v4, %v1066_v0 }
 0x5f1   :  { %v1074_v6 = vsel %vm1073_vm6, %v1071_v2, %v1064_v3 }
 0x5f2   :  { %2746 = vmatprep.mubr.msk.f32.mxu0 %vm163_vm0, %v1074_v6 }
 0x5f3   :  { %2747 = vmatmul.mubr.msk.f32.vlgmr.msra.gmra.mrb[8].mxu0 %vm163_vm0, %v1075_v8  ;;  %v2534_v8 = vld [vmem:[%s3857_s5] ss:$0 sm:$0xff] }
 0x6c6   :  { %v2748_v10 = vpop.f32.mrb[8].mxu0 }
 0x6c7   :  { %v1165_v17 = vadd.f32 %v2748_v10, %v2529_v9  ;;  %v1159_v19 = vpop.f32.mrb[9].mxu0  ;;  %v2535_v10 = vld [vmem:[#allocation5] ss:$0 sm:$0xff] }
 0x6c8   :  { %v1160_v11 = vadd.f32 %v2529_v9, %v1159_v19 }
 0x6c9   :  { %v1169_v12 = vadd.f32 %v1165_v17, %v3527_v7 }
 0x6ca   :  { %v1168_v14 = vadd.f32 %v1160_v11, %v3520_v5 }
 0x6cb   :  { %v1175_v15 = vsel %vm163_vm0, %v1169_v12, 0.0 }
 0x6cc   :  { %1176 = vadd.xlane.f32.xlu1 %v1175_v15  ;;  %v1172_v16 = vsel %vm163_vm0, %v1168_v14, 0.0 }
 0x6cd   :  { %1173 = vadd.xlane.f32.xlu0 %v1172_v16  ;;  %v2541_v16 = vld [vmem:[%s3854_s2 + $0x1] ss:$0 sm:$0xff] }
 0x759   :  { %v1177_v18 = vpop.xlane.xlu1 %1176 }
 0x75a   :  { %v1180_v20 = vmul.f32 0.03125, %v1177_v18  ;;  %v1174_v21 = vpop.xlane.xlu0 %1173 }
 0x75b   :  { %v1179_v23 = vmul.f32 0.03125, %v1174_v21 }
 0x75c   :  { %v1182_v24 = vsub.f32 %v1169_v12, %v1180_v20 }
 0x75d   :  { %v1181_v25 = vsub.f32 %v1168_v14, %v1179_v23 }
 0x75e   :  { %v1184_v22 = vmul.f32 %v1182_v24, %v1182_v24 }
 0x75f   :  { %v1183_v27 = vmul.f32 %v1181_v25, %v1181_v25 }
 0x760   :  { %v1188_v7 = vsel %vm163_vm0, %v1184_v22, 0.0 }
 0x761   :  { %v1185_v28 = vsel %vm163_vm0, %v1183_v27, 0.0 }
 0x762   :  { %1186 = vadd.xlane.f32.xlu0 %v1185_v28 }
 0x766   :  { %1189 = vadd.xlane.f32.xlu0 %v1188_v7 }
 0x7ef   :  { %v1187_v5 = vpop.xlane.xlu0 %1186 }
 0x7f0   :  { %v1191_v29 = vmul.f32 0.03125, %v1187_v5 }
 0x7f2   :  { %v1193_v30 = vadd.f32 1e-05, %v1191_v29 }
 0x7f3   :  { %v1190_v31 = vpop.xlane.xlu0 %1189 }
 0x7f4   :  { %3090 = vrsqrt.f32 %v1193_v30  ;;  %v1192_v32 = vmul.f32 0.03125, %v1190_v31 }
 0x7f6   :  { %v1194_v33 = vadd.f32 1e-05, %v1192_v32 }
 0x7f8   :  { %3092 = vrsqrt.f32 %v1194_v33 }
 0x7fe   :  { %v3091_v34 = vpop.eup %3090 }
 0x7ff   :  { %v1197_v13 = vmul.f32 %v3091_v34, %v1181_v25 }
 0x801   :  { %v1205_v37 = vmul.f32 %v2532_v35, %v1197_v13 }
 0x802   :  { %v3093_v38 = vpop.eup %3092 }
 0x803   :  { %v3665_v39 = vadd.f32 %v2533_v36, %v1205_v37  ;;  %v1198_v40 = vmul.f32 %v3093_v38, %v1182_v24 }
 0x805   :  { %v1217_v41 = vsel %vm163_vm0, %v3665_v39, 0.0  ;;  %v1206_v42 = vmul.f32 %v2532_v35, %v1198_v40 }
 0x806   :  { %1218 = vadd.xlane.f32.xlu1 %v1217_v41 }
 0x807   :  { %v3669_v43 = vadd.f32 %v2533_v36, %v1206_v42 }
 0x809   :  { %v1220_v44 = vsel %vm163_vm0, %v3669_v43, 0.0 }
 0x80a   :  { %1221 = vadd.xlane.f32.xlu0 %v1220_v44 }
 0x893   :  { %v1219_v45 = vpop.xlane.xlu1 %1218 }
 0x894   :  { %v1223_v46 = vmul.f32 0.03125, %v1219_v45 }
 0x896   :  { %v1225_v47 = vsub.f32 %v3665_v39, %v1223_v46 }
 0x897   :  { %v1222_v48 = vpop.xlane.xlu0 %1221 }
 0x898   :  { %v1224_v49 = vmul.f32 0.03125, %v1222_v48  ;;  %v1227_v50 = vmul.f32 %v1225_v47, %v1225_v47 }
 0x89a   :  { %v1226_v51 = vsub.f32 %v3669_v43, %v1224_v49  ;;  %v1229_v52 = vsel %vm163_vm0, %v1227_v50, 0.0 }
 0x89b   :  { %1230 = vadd.xlane.f32.xlu1 %v1229_v52 }
 0x89c   :  { %v1228_v53 = vmul.f32 %v1226_v51, %v1226_v51 }
 0x89e   :  { %v1232_v56 = vsel %vm163_vm0, %v1228_v53, 0.0 }
 0x89f   :  { %1233 = vadd.xlane.f32.xlu0 %v1232_v56 }
 0x928   :  { %v1231_v63 = vpop.xlane.xlu1 %1230 }
 0x929   :  { %v1235_v0 = vmul.f32 0.03125, %v1231_v63 }
 0x92b   :  { %v1237_v1 = vadd.f32 1e-05, %v1235_v0 }
 0x92c   :  { %v1234_v2 = vpop.xlane.xlu0 %1233 }
 0x92d   :  { %3094 = vrsqrt.f32 %v1237_v1  ;;  %v1236_v3 = vmul.f32 0.03125, %v1234_v2 }
 0x92f   :  { %v1238_v4 = vadd.f32 1e-05, %v1236_v3 }
 0x931   :  { %3096 = vrsqrt.f32 %v1238_v4 }
 0x937   :  { %v3095_v6 = vpop.eup %3094 }
 0x938   :  { %v1241_v9 = vmul.f32 %v3095_v6, %v1225_v47 }
 0x93a   :  { %v1249_v17 = vmul.f32 %v2534_v8, %v1241_v9 }
 0x93b   :  { %v3097_v19 = vpop.eup %3096 }
 0x93c   :  { %v1242_v11 = vmul.f32 %v3097_v19, %v1226_v51  ;;  %v1257_v12 = vadd.f32 %v2535_v10, %v1249_v17 }
 0x93e   :  { %v1250_v14 = vmul.f32 %v2534_v8, %v1242_v11  ;;  %2757 = vmatprep.mubr.msk.f32.mxu1 %vm163_vm0, %v1257_v12 }
 0x940   :  { %v1258_v15 = vadd.f32 %v2535_v10, %v1250_v14 }
 0x942   :  { %2758 = vmatmul.mubr.msk.f32.vlgmr.msra.gmra.mrb[10].mxu1 %vm163_vm0, %v1258_v15 }
 0xa15   :  { %v2759_v18 = vpop.f32.mrb[10].mxu1 }
 0xa16   :  { %v1350_v20 = vadd.f32 %v2759_v18, %v2541_v16  ;;  %v1344_v21 = vpop.f32.mrb[11].mxu1 }
 0xa17   :  { %v1345_v23 = vadd.f32 %v2541_v16, %v1344_v21 }
 0xa18   :  { %1361 = vrot.lane.b32.xlu1 %v1350_v20, %s3333_s3  ;;  %1357 = vrot.lane.b32.xlu0 %v1350_v20, %s3334_s15 }
 0xa19   :  { %2764 = vmatprep.mubr.msk.f32.mxu0 %vm263_vm1, %v1345_v23  ;;  %v3702_v24 = vpack.i.bf16 %v1350_v20, %v1345_v23 }
 0xa1c   :  { %1363 = vrot.lane.b32.xlu0 %v1345_v23, %s3335_s0  ;;  %1355 = vrot.lane.b32.xlu1 %v1345_v23, %s3334_s15 }
 0xa20   :  { %3019 = vrot.lane.b32.xlu0 %v3702_v24, %s3336_s23  ;;  %1359 = vrot.lane.b32.xlu1 %v1345_v23, %s3333_s3 }
 0xa24   :  { %1365 = vrot.lane.b32.xlu1 %v1350_v20, %s3335_s0 }
 0xa8a   :  { %v1362_v25 = vpop.permute.xlu1 %1361  ;;  %v1358_v27 = vpop.permute.xlu0 %1357 }
 0xa8e   :  { %v1364_v28 = vpop.permute.xlu0 %1363  ;;  %v1356_v22 = vpop.permute.xlu1 %1355 }
 0xa8f   :  { %v3708_v7 = vpack.i.bf16 %v1358_v27, %v1356_v22  ;;  %2771 = vmatprep.mubr.msk.f32.mxu1 %vm263_vm1, %v1356_v22 }
 0xa91   :  { %3024 = vrot.lane.b32.xlu1 %v3708_v7, %s3336_s23 }
 0xa92   :  { %v3020_v5 = vpop.permute.xlu0 %3019  ;;  %v1360_v29 = vpop.permute.xlu1 %1359 }
 0xa93   :  { %v3022_v30 = vunpack.i.h.bf16 %v3020_v5  ;;  %v3021_v31 = vunpack.i.l.bf16 %v3020_v5  ;;  %v3713_v32 = vpack.i.bf16 %v1362_v25, %v1360_v29 }
 0xa95   :  { %v2902_v33 = vpack.c.bf16 %v3022_v30, %v3021_v31  ;;  %3029 = vrot.lane.b32.xlu0 %v3713_v32, %s3336_s23 }
 0xa96   :  { %v1366_v34 = vpop.permute.xlu1 %1365 }
 0xa97   :  { %v3717_v35 = vpack.i.bf16 %v1366_v34, %v1364_v28  ;;  %2904 = vmatprep.subr.msk.bf16.mxu0 %vm3560_vm2, %v2902_v33 }
 0xa98   :  { %2907 = vmatpush3.bf16.xpose.msk.msra.mxu0 %vm3560_vm2, %v2902_v33 }
 0xa99   :  { %3034 = vrot.lane.b32.xlu1 %v3717_v35, %s3336_s23 }
 0xa9f   :  { %2765 = vmatmul.mubr.msk.f32.vlgmr.msra.gmra.mrb[10].mxu0 %vm263_vm1, %v1350_v20 }
 0xaa0   :  { %2778 = vmatprep.mubr.msk.f32.mxu0 %vm263_vm1, %v1360_v29 }
 0xb03   :  { %v3025_v13 = vpop.permute.xlu1 %3024 }
 0xb04   :  { %v3027_v36 = vunpack.i.h.bf16 %v3025_v13  ;;  %v3026_v37 = vunpack.i.l.bf16 %v3025_v13 }
 0xb06   :  { %v2908_v38 = vpack.c.bf16 %v3027_v36, %v3026_v37 }
 0xb07   :  { %v3030_v40 = vpop.permute.xlu0 %3029 }
 0xb08   :  { %v3032_v41 = vunpack.i.h.bf16 %v3030_v40  ;;  %v3031_v42 = vunpack.i.l.bf16 %v3030_v40  ;;  %2910 = vmatprep.subr.msk.bf16.mxu1 %vm3560_vm2, %v2908_v38 }
 0xb09   :  { %2913 = vmatpush3.bf16.xpose.msk.msra.mxu1 %vm3560_vm2, %v2908_v38 }
 0xb0a   :  { %v2914_v44 = vpack.c.bf16 %v3032_v41, %v3031_v42 }
 0xb0b   :  { %v3035_v45 = vpop.permute.xlu1 %3034 }
 0xb0c   :  { %v3037_v46 = vunpack.i.h.bf16 %v3035_v45  ;;  %v3036_v47 = vunpack.i.l.bf16 %v3035_v45  ;;  %2916 = vmatprep.subr.msk.bf16.mxu0 %vm3560_vm2, %v2914_v44 }
 0xb0d   :  { %2919 = vmatpush3.bf16.xpose.msk.msra.mxu0 %vm3560_vm2, %v2914_v44 }
 0xb0e   :  { %v2920_v48 = vpack.c.bf16 %v3037_v46, %v3036_v47 }
 0xb10   :  { %2772 = vmatmul.mubr.msk.f32.vlgmr.msra.gmra.mrb[12].mxu1 %vm263_vm1, %v1358_v27  ;;  %2922 = vmatprep.subr.msk.bf16.mxu1 %vm3560_vm2, %v2920_v48 }
 0xb11   :  { %2925 = vmatpush3.bf16.xpose.msk.msra.mxu1 %vm3560_vm2, %v2920_v48  ;;  %2785 = vmatprep.mubr.msk.f32.mxu1 %vm263_vm1, %v1364_v28 }
 0xb14   :  { %2779 = vmatmul.mubr.msk.f32.vlgmr.msra.gmra.mrb[12].mxu0 %vm263_vm1, %v1362_v25 }
 0xb18   :  { %2786 = vmatmul.mubr.msk.f32.vlgmr.msra.gmra.mrb[14].mxu1 %vm263_vm1, %v1366_v34 }
 0xb72   :  { %v2766_v49 = vpop.f32.mrb[10].mxu0 }
 0xb73   :  { %v1451_v50 = vadd.f32 %v2766_v49, %v3586_v54  ;;  %v1445_v51 = vpop.f32.mrb[11].mxu0 }
 0xb74   :  { %v1446_v52 = vadd.f32 %v1445_v51, %v3588_v55 }
 0xb75   :  { %v1718_v53 = vsel %vm608_vm5, %v1451_v50, -inf }
 0xb76   :  { %1719 = vmax.xlane.f32.xlu1 %v1718_v53  ;;  %v1715_v56 = vsel %vm608_vm5, %v1446_v52, -inf }
 0xb77   :  { %1716 = vmax.xlane.f32.xlu0 %v1715_v56 }
 0xbe3   :  { %v2773_v26 = vpop.f32.mrb[12].mxu1 }
 0xbe4   :  { %v1538_v57 = vadd.f32 %v2773_v26, %v3586_v54  ;;  %v1532_v58 = vpop.f32.mrb[13].mxu1 }
 0xbe5   :  { %v1533_v59 = vadd.f32 %v1532_v58, %v3588_v55 }
 0xbe6   :  { %v1724_v60 = vsel %vm608_vm5, %v1538_v57, -inf }
 0xbe7   :  { %v2780_v61 = vpop.f32.mrb[12].mxu0  ;;  %1725 = vmax.xlane.f32.xlu0 %v1724_v60  ;;  %v1721_v1 = vsel %vm608_vm5, %v1533_v59, -inf }
 0xbe8   :  { %v1619_v62 = vpop.f32.mrb[13].mxu0  ;;  %v1625_v0 = vadd.f32 %v2780_v61, %v3586_v54 }
 0xbe9   :  { %v1620_v63 = vadd.f32 %v1619_v62, %v3588_v55 }
 0xbea   :  { %v1730_v9 = vsel %vm608_vm5, %v1625_v0, -inf }
 0xbeb   :  { %v2787_v2 = vpop.f32.mrb[14].mxu1  ;;  %1722 = vmax.xlane.f32.xlu0 %v1721_v1  ;;  %v1727_v3 = vsel %vm608_vm5, %v1620_v63, -inf }
 0xbec   :  { %v1706_v4 = vpop.f32.mrb[15].mxu1  ;;  %1728 = vmax.xlane.f32.xlu1 %v1727_v3  ;;  %v1712_v8 = vadd.f32 %v2787_v2, %v3586_v54 }
 0xbed   :  { %v3755_v6 = vadd.f32 %v1706_v4, %v3588_v55 }
 0xbee   :  { %v1736_v17 = vsel %vm608_vm5, %v1712_v8, -inf }
 0xbef   :  { %1731 = vmax.xlane.f32.xlu0 %v1730_v9  ;;  %v1733_v10 = vsel %vm608_vm5, %v3755_v6, -inf }
 0xbf0   :  { %1734 = vmax.xlane.f32.xlu1 %v1733_v10 }
 0xbf3   :  { %1737 = vmax.xlane.f32.xlu0 %v1736_v17 }
 0xc01   :  { %3039 = vrot.lane.b32.xlu1 %v3702_v24, %s3338_s25 }
 0xc03   :  { %v1720_v19 = vpop.xlane.xlu1 %1719 }
 0xc04   :  { %v1740_v11 = vsub.f32 %v1451_v50, %v1720_v19  ;;  %v1717_v55 = vpop.xlane.xlu0 %1716 }
 0xc05   :  { %v1739_v14 = vsub.f32 %v1446_v52, %v1717_v55 }
 0xc06   :  { %v1749_v12 = vmul.f32 1.442695, %v1740_v11 }
 0xc07   :  { %v1747_v15 = vmul.f32 1.442695, %v1739_v14 }
 0xc08   :  { %3098 = vpow2.f32 %v1749_v12 }
 0xc09   :  { %3100 = vpow2.f32 %v1747_v15 }
 0xc12   :  { %v3764_v54 = vpop.eup %3098 }
 0xc13   :  { %v1766_v16 = vsel %vm608_vm5, %v3764_v54, 0.0  ;;  %v3101_v18 = vpop.eup %3100 }
 0xc14   :  { %1767 = vadd.xlane.f32.xlu0 %v1766_v16  ;;  %v1763_v20 = vsel %vm608_vm5, %v3101_v18, 0.0 }
 0xc25   :  { %1764 = vadd.xlane.f32.xlu1 %v1763_v20 }
 0xc74   :  { %v1726_v21 = vpop.xlane.xlu0 %1725 }
 0xc75   :  { %v1742_v23 = vsub.f32 %v1538_v57, %v1726_v21 }
 0xc77   :  { %v1753_v24 = vmul.f32 1.442695, %v1742_v23 }
 0xc78   :  { %v1723_v25 = vpop.xlane.xlu0 %1722 }
 0xc79   :  { %3102 = vpow2.f32 %v1753_v24  ;;  %v1741_v27 = vsub.f32 %v1533_v59, %v1723_v25  ;;  %v1729_v28 = vpop.xlane.xlu1 %1728 }
 0xc7a   :  { %v1743_v22 = vsub.f32 %v1620_v63, %v1729_v28 }
 0xc7b   :  { %v1751_v5 = vmul.f32 1.442695, %v1741_v27 }
 0xc7c   :  { %v1755_v29 = vmul.f32 1.442695, %v1743_v22  ;;  %v1732_v30 = vpop.xlane.xlu0 %1731 }
 0xc7d   :  { %3104 = vpow2.f32 %v1751_v5  ;;  %v1744_v31 = vsub.f32 %v1625_v0, %v1732_v30  ;;  %v1735_v33 = vpop.xlane.xlu1 %1734 }
 0xc7e   :  { %3106 = vpow2.f32 %v1755_v29  ;;  %v1745_v56 = vsub.f32 %v3755_v6, %v1735_v33  ;;  %v2183_v33 = vld [vmem:[#allocation2 + $0x28] sm:$0xff] }
 0xc7f   :  { %v1757_v34 = vmul.f32 1.442695, %v1744_v31  ;;  %v2182_v31 = vld [vmem:[#allocation2 + $0x20] sm:$0xff] }
 0xc80   :  { %v1738_v13 = vpop.xlane.xlu0 %1737  ;;  %v1759_v57 = vmul.f32 1.442695, %v1745_v56 }
 0xc81   :  { %3108 = vpow2.f32 %v1757_v34  ;;  %v1746_v36 = vsub.f32 %v1712_v8, %v1738_v13  ;;  %v3040_v37 = vpop.permute.xlu1 %3039  ;;  %v2184_v34 = vld [vmem:[#allocation2 + $0x30] sm:$0xff]  ;;  %v2942_v13 = vpack.c.bf16 %v2183_v33, %v2182_v31 }
 0xc82   :  { %v3042_v38 = vunpack.i.h.bf16 %v3040_v37  ;;  %v3041_v40 = vunpack.i.l.bf16 %v3040_v37 }
 0xc83   :  { %v3769_v41 = vpop.eup %3102  ;;  %v1761_v42 = vmul.f32 1.442695, %v1746_v36  ;;  %v2185_v36 = vld [vmem:[#allocation2 + $0x38] sm:$0xff] }
 0xc84   :  { %v2926_v44 = vpack.c.bf16 %v3042_v38, %v3041_v40  ;;  %v1772_v45 = vsel %vm608_vm5, %v3769_v41, 0.0  ;;  %v2946_v37 = vpack.c.bf16 %v2185_v36, %v2184_v34 }
 0xc85   :  { %3110 = vpow2.f32 %v1761_v42  ;;  %1773 = vadd.xlane.f32.xlu0 %v1772_v45 }
 0xc86   :  { %2927 = vmatprep.subr.bf16.mxu0 %v2926_v44 }
 0xc87   :  { %v3105_v46 = vpop.eup %3104  ;;  %2929 = vmatpush3.bf16.msra.mxu0 %v2926_v44 }
 0xc88   :  { %v1769_v47 = vsel %vm608_vm5, %v3105_v46, 0.0  ;;  %v3107_v48 = vpop.eup %3106 }
 0xc89   :  { %1770 = vadd.xlane.f32.xlu1 %v1769_v47  ;;  %v1775_v50 = vsel %vm608_vm5, %v3107_v48, 0.0 }
 0xc8b   :  { %v3109_v49 = vpop.eup %3108 }
 0xc8c   :  { %v1778_v51 = vsel %vm608_vm5, %v3109_v49, 0.0 }
 0xc8d   :  { %1776 = vadd.xlane.f32.xlu1 %v1775_v50  ;;  %1779 = vadd.xlane.f32.xlu0 %v1778_v51 }
 0xc8f   :  { %v3776_v52 = vpop.eup %3110 }
 0xc90   :  { %v1784_v53 = vsel %vm608_vm5, %v3776_v52, 0.0 }
 0xc91   :  { %1785 = vadd.xlane.f32.xlu0 %v1784_v53 }
 0xc9e   :  { %3049 = vrot.lane.b32.xlu1 %v3713_v32, %s3338_s25 }
 0xca1   :  { %v1768_v26 = vpop.xlane.xlu0 %1767 }
 0xca2   :  { %3112 = vrcp.f32 %v1768_v26 }
 0xca7   :  { %3044 = vrot.lane.b32.xlu0 %v3708_v7, %s3338_s25 }
 0xcac   :  { %v3113_v59 = vpop.eup %3112 }
 0xcad   :  { %v1796_v63 = vmul.f32 %v3113_v59, %v3764_v54  ;;  %v2569_v59 = vld [vmem:[%s3856_s4 + $0x1] ss:$0 sm:$0xff] }
 0xcb2   :  { %v1765_v58 = vpop.xlane.xlu1 %1764 }
 0xcb3   :  { %3114 = vrcp.f32 %v1765_v58 }
 0xcb4   :  { %3116 = vpow2.f32 %v1759_v57 }
 0xcbd   :  { %v3115_v60 = vpop.eup %3114 }
 0xcbe   :  { %v3117_v61 = vpop.eup %3116  ;;  %v1795_v62 = vmul.f32 %v3115_v60, %v3101_v18 }
 0xcbf   :  { %v1781_v7 = vsel %vm608_vm5, %v3117_v61, 0.0 }
 0xcc0   :  { %2792 = vmatprep.mubr.msk.f32.mxu0 %vm608_vm5, %v1795_v62 }
 0xcc1   :  { %2793 = vmatmul.mubr.msk.f32.vlgmr.msra.gmra.mrb[14].mxu0 %vm608_vm5, %v1796_v63 }
 0xcc2   :  { %1782 = vadd.xlane.f32.xlu1 %v1781_v7 }
 0xcd3   :  { %3054 = vrot.lane.b32.xlu1 %v3717_v35, %s3338_s25 }
 0xd12   :  { %v1774_v32 = vpop.xlane.xlu0 %1773 }
 0xd16   :  { %v1771_v0 = vpop.xlane.xlu1 %1770 }
 0xd17   :  { %3118 = vrcp.f32 %v1771_v0 }
 0xd18   :  { %3120 = vrcp.f32 %v1774_v32 }
 0xd1a   :  { %v1777_v1 = vpop.xlane.xlu1 %1776  ;;  %v1780_v2 = vpop.xlane.xlu0 %1779 }
 0xd1b   :  { %3122 = vrcp.f32 %v1777_v1 }
 0xd1c   :  { %3124 = vrcp.f32 %v1780_v2 }
 0xd1e   :  { %v3050_v3 = vpop.permute.xlu1 %3049  ;;  %v1786_v4 = vpop.xlane.xlu0 %1785 }
 0xd1f   :  { %v3052_v6 = vunpack.i.h.bf16 %v3050_v3  ;;  %v3051_v8 = vunpack.i.l.bf16 %v3050_v3  ;;  %3126 = vrcp.f32 %v1786_v4 }
 0xd21   :  { %v3119_v9 = vpop.eup %3118  ;;  %v2934_v10 = vpack.c.bf16 %v3052_v6, %v3051_v8 }
 0xd22   :  { %v3045_v17 = vpop.permute.xlu0 %3044  ;;  %v1797_v19 = vmul.f32 %v3119_v9, %v3105_v46  ;;  %v3121_v35 = vpop.eup %3120 }
 0xd23   :  { %v3047_v11 = vunpack.i.h.bf16 %v3045_v17  ;;  %v3046_v12 = vunpack.i.l.bf16 %v3045_v17  ;;  %2935 = vmatprep.subr.bf16.mxu0 %v2934_v10  ;;  %v1798_v18 = vmul.f32 %v3121_v35, %v3769_v41 }
 0xd24   :  { %2799 = vmatprep.mubr.msk.f32.mxu1 %vm608_vm5, %v1797_v19  ;;  %2937 = vmatpush3.bf16.msra.mxu0 %v2934_v10 }
 0xd25   :  { %v3123_v55 = vpop.eup %3122  ;;  %v2930_v14 = vpack.c.bf16 %v3047_v11, %v3046_v12  ;;  %2943 = vmatprep.subr.bf16.mxu0 %v2942_v13 }
 0xd26   :  { %v3125_v54 = vpop.eup %3124  ;;  %v1799_v15 = vmul.f32 %v3123_v55, %v3107_v48 }
 0xd27   :  { %v1800_v16 = vmul.f32 %v3125_v54, %v3109_v49  ;;  %2931 = vmatprep.subr.bf16.mxu1 %v2930_v14 }
 0xd28   :  { %2933 = vmatpush3.bf16.msra.mxu1 %v2930_v14  ;;  %2806 = vmatprep.mubr.msk.f32.mxu0 %vm608_vm5, %v1799_v15  ;;  %v2572_v15 = vld [vmem:[#allocation7 + $0x1] ss:$0 sm:$0xff] }
 0xd29   :  { %2807 = vmatmul.mubr.msk.f32.vlgmr.msra.gmra.mrb[16].mxu0 %vm608_vm5, %v1800_v16  ;;  %v3127_v27 = vpop.eup %3126 }
 0xd2a   :  { %v1802_v5 = vmul.f32 %v3127_v27, %v3776_v52  ;;  %2945 = vmatpush3.bf16.msra.mxu0 %v2942_v13 }
 0xd2b   :  { %2800 = vmatmul.mubr.msk.f32.vlgmr.msra.gmra.mrb[16].mxu1 %vm608_vm5, %v1798_v18  ;;  %2947 = vmatprep.subr.bf16.mxu0 %v2946_v37  ;;  %v2573_v18 = vld [vmem:[#allocation8 + $0x1] ss:$0 sm:$0xff] }
 0xd2e   :  { %2949 = vmatpush3.bf16.msra.mxu0 %v2946_v37 }
 0xd4f   :  { %v1783_v20 = vpop.xlane.xlu1 %1782 }
 0xd50   :  { %3128 = vrcp.f32 %v1783_v20 }
 0xd53   :  { %v3055_v21 = vpop.permute.xlu1 %3054 }
 0xd54   :  { %v3057_v23 = vunpack.i.h.bf16 %v3055_v21  ;;  %v3056_v24 = vunpack.i.l.bf16 %v3055_v21 }
 0xd56   :  { %v2938_v25 = vpack.c.bf16 %v3057_v23, %v3056_v24 }
 0xd58   :  { %2939 = vmatprep.subr.bf16.mxu1 %v2938_v25 }
 0xd59   :  { %2941 = vmatpush3.bf16.msra.mxu1 %v2938_v25 }
 0xd5a   :  { %v3129_v28 = vpop.eup %3128 }
 0xd5b   :  { %v1801_v22 = vmul.f32 %v3129_v28, %v3117_v61 }
 0xd5d   :  { %2813 = vmatprep.mubr.msk.f32.mxu1 %vm608_vm5, %v1801_v22 }
 0xd5e   :  { %2814 = vmatmul.mubr.msk.f32.vlgmr.msra.gmra.mrb[18].mxu1 %vm608_vm5, %v1802_v5 }
 0xd94   :  { %v2794_v29 = vpop.f32.mrb[14].mxu0 }
 0xd95   :  { %v1881_v30 = vpop.f32.mrb[15].mxu0 }
 0xdfc   :  { %v2808_v38 = vpop.f32.mrb[16].mxu0 }
 0xdfd   :  { %v2055_v40 = vpop.f32.mrb[17].mxu0 }
 0xdfe   :  { %v2801_v41 = vpop.f32.mrb[16].mxu1 }
 0xdff   :  { %2155 = vrot.lane.b32.xlu1 %v2801_v41, %s3329_s24  ;;  %v1968_v42 = vpop.f32.mrb[17].mxu1 }
 0xe00   :  { %2153 = vrot.lane.b32.xlu0 %v1968_v42, %s3329_s24 }
 0xe03   :  { %2163 = vrot.lane.b32.xlu1 %v2808_v38, %s3325_s26 }
 0xe04   :  { %2161 = vrot.lane.b32.xlu0 %v2055_v40, %s3325_s26 }
 0xe31   :  { %v2815_v44 = vpop.f32.mrb[18].mxu1 }
 0xe32   :  { %2171 = vrot.lane.b32.xlu1 %v2815_v44, %s3339_s10  ;;  %v2142_v45 = vpop.f32.mrb[19].mxu1 }
 0xe33   :  { %2169 = vrot.lane.b32.xlu0 %v2142_v45, %s3339_s10 }
 0xe71   :  { %v2156_v46 = vpop.permute.xlu1 %2155 }
 0xe72   :  { %v2154_v47 = vpop.permute.xlu0 %2153  ;;  %v2176_v52 = vsel %vm263_vm1, %v2794_v29, %v2156_v46 }
 0xe73   :  { %v2175_v50 = vsel %vm263_vm1, %v1881_v30, %v2154_v47 }
 0xe75   :  { %v2164_v48 = vpop.permute.xlu1 %2163 }
 0xe76   :  { %v2162_v49 = vpop.permute.xlu0 %2161  ;;  %v2178_v26 = vsel %vm608_vm5, %v2176_v52, %v2164_v48 }
 0xe77   :  { %v2177_v53 = vsel %vm608_vm5, %v2175_v50, %v2162_v49 }
 0xea4   :  { %v2172_v51 = vpop.permute.xlu1 %2171 }
 0xea5   :  { %v2170_v56 = vpop.permute.xlu0 %2169  ;;  %v2180_v58 = vsel %vm1073_vm6, %v2178_v26, %v2172_v51 }
 0xea6   :  { %v2179_v57 = vsel %vm1073_vm6, %v2177_v53, %v2170_v56 }
 0xea7   :  { %2824 = vmatprep.mubr.msk.f32.mxu0 %vm163_vm0, %v2179_v57 }
 0xea8   :  { %2825 = vmatmul.mubr.msk.f32.vlgmr.msra.gmra.mrb[18].mxu0 %vm163_vm0, %v2180_v58  ;;  %v2395_v58 = vld [vmem:[%s3863_s11] sm:$0xff] }
 0xf7b   :  { %v2826_v60 = vpop.f32.mrb[18].mxu0 }
 0xf7c   :  { %v2272_v61 = vadd.f32 %v2826_v60, %v2569_v59  ;;  %v2266_v62 = vpop.f32.mrb[19].mxu0  ;;  %v2397_v60 = vld [vmem:[%s3863_s11 + $0x10] sm:$0xff] }
 0xf7d   :  { %v2267_v63 = vadd.f32 %v2569_v59, %v2266_v62  ;;  %v2396_v59 = vld [vmem:[%s3863_s11 + $0x8] sm:$0xff] }
 0xf7e   :  { %v2276_v7 = vadd.f32 %v2272_v61, %v3669_v43  ;;  %v3340_v61 = vmov 0.0|0.0   ;;  %v2951_v62 = vpack.c.bf16 %v2396_v59, %v2395_v58 }
 0xf7f   :  { %v2275_v32 = vadd.f32 %v2267_v63, %v3665_v39  ;;  %2950 = vmatprep.subr.bf16.mxu1 %v3340_v61  ;;  %v2398_v63 = vld [vmem:[%s3863_s11 + $0x18] sm:$0xff]  ;;  %s3343_s11 = smov [#allocation14]  }
 0xf80   :  { %v2284_v0 = vsel %vm163_vm0, %v2276_v7, 0.0  ;;  %2952 = vmatpush3.bf16.msra.mxu1 %v2951_v62  ;;  %s2490_s15 = sshll.u32 %s3343_s11, 4  ;;  %s2491_s15 = int_to_ptr.vmem [resolvable:$true] %s2490_s15 }
 0xf81   :  { %2285 = vadd.xlane.f32.xlu1 %v2284_v0  ;;  %v2281_v1 = vsel %vm163_vm0, %v2275_v32, 0.0  ;;  %2953 = vmatprep.subr.bf16.mxu1 %v3340_v61  ;;  %s3290_s0 = scalar_lea.vmem %s2491_s15, 32  ;;  %p3295_p1 = scmp.lt.s32.totalorder %s2491_s15, %s2491_s15 }
 0xf82   :  { %2282 = vadd.xlane.f32.xlu0 %v2281_v1  ;;  %p3291_p0 = scmp.ne.s32.totalorder %s2491_s15, %s3290_s0  ;;  %p3296_p2 = scmp.lt.s32.totalorder %s3290_s0, %s3290_s0 }
 0xf84   :  { %p3297_p3 = por %p3296_p2, %p3295_p1 }
 0xf86   :  { %p3298_p4 = pnand %p3297_p3, %p3291_p0 }
0x100e   :  { %v2286_v2 = vpop.xlane.xlu1 %2285 }
0x100f   :  { %v2288_v3 = vmul.f32 0.03125, %v2286_v2  ;;  %v2283_v4 = vpop.xlane.xlu0 %2282 }
0x1010   :  { %v2287_v6 = vmul.f32 0.03125, %v2283_v4  ;;  %v2574_v4 = vld [vmem:[#allocation10] ss:$0 sm:$0xff] }
0x1011   :  { %v2290_v8 = vsub.f32 %v2276_v7, %v2288_v3  ;;  %v3342_v7 = vmov 0.0  }
0x1012   :  { %v2289_v9 = vsub.f32 %v2275_v32, %v2287_v6  ;;  %2835 = vmatprep.mubr.msk.f32.mxu1 %vm3341_vm9, %v3342_v7  ;;  %v2954_v32 = vpack.c.bf16 %v2398_v63, %v2397_v60 }
0x1013   :  { %v2292_v19 = vmul.f32 %v2290_v8, %v2290_v8 }
0x1014   :  { %v2291_v10 = vmul.f32 %v2289_v9, %v2289_v9  ;;  %2955 = vmatpush3.bf16.msra.mxu1 %v2954_v32 }
0x1015   :  { %v2296_v43 = vsel %vm163_vm0, %v2292_v19, 0.0 }
0x1016   :  { %v2293_v17 = vsel %vm163_vm0, %v2291_v10, 0.0 }
0x1017   :  { %2294 = vadd.xlane.f32.xlu0 %v2293_v17  ;;  %v2575_v17 = vld [vmem:[#allocation11] ss:$0 sm:$0xff] }
0x101b   :  { %2297 = vadd.xlane.f32.xlu0 %v2296_v43 }
0x10a4   :  { %v2295_v39 = vpop.xlane.xlu0 %2294 }
0x10a5   :  { %v2299_v11 = vmul.f32 0.03125, %v2295_v39 }
0x10a7   :  { %v2301_v12 = vadd.f32 1e-05, %v2299_v11 }
0x10a8   :  { %v2298_v35 = vpop.xlane.xlu0 %2297 }
0x10a9   :  { %3130 = vrsqrt.f32 %v2301_v12  ;;  %v2300_v55 = vmul.f32 0.03125, %v2298_v35 }
0x10ab   :  { %v2302_v14 = vadd.f32 1e-05, %v2300_v55 }
0x10ad   :  { %3132 = vrsqrt.f32 %v2302_v14  ;;  %v2576_v14 = vld [vmem:[#allocation13] ss:$0 sm:$0xff] }
0x10b3   :  { %v3131_v54 = vpop.eup %3130 }
0x10b4   :  { %v2305_v16 = vmul.f32 %v3131_v54, %v2289_v9 }
0x10b6   :  { %v2313_v20 = vmul.f32 %v2572_v15, %v2305_v16 }
0x10b7   :  { %v3133_v21 = vpop.eup %3132 }
0x10b8   :  { %v2306_v23 = vmul.f32 %v3133_v21, %v2290_v8  ;;  %v2321_v24 = vadd.f32 %v2573_v18, %v2313_v20 }
0x10ba   :  { %v2314_v25 = vmul.f32 %v2572_v15, %v2306_v23  ;;  %v2323_v27 = vsel %vm163_vm0, %v2321_v24, 0.0 }
0x10bb   :  { %v2324_v28 = vrot.slane %v2323_v27, 4 }
0x10bc   :  { %v2322_v22 = vadd.f32 %v2573_v18, %v2314_v25 }
0x10bd   :  { %v2325_v5 = vadd.f32 %v2324_v28, %v2323_v27 }
0x10be   :  { %v2330_v29 = vsel %vm163_vm0, %v2322_v22, 0.0 }
0x10bf   :  { %v2326_v30 = vrot.slane %v2325_v5, 2  ;;  %v2331_v31 = vrot.slane %v2330_v29, 4 }
0x10c1   :  { %v2327_v33 = vadd.f32 %v2326_v30, %v2325_v5  ;;  %v2332_v34 = vadd.f32 %v2331_v31, %v2330_v29 }
0x10c3   :  { %v2328_v13 = vrot.slane %v2327_v33, 1  ;;  %v2333_v36 = vrot.slane %v2332_v34, 2 }
0x10c5   :  { %v2334_v37 = vadd.f32 %v2333_v36, %v2332_v34  ;;  %v2329_v38 = vadd.f32 %v2328_v13, %v2327_v33 }
0x10c7   :  { %v2335_v40 = vrot.slane %v2334_v37, 1  ;;  %v2338_v42 = vmul.f32 0.125, %v2329_v38 }
0x10c9   :  { %v2336_v41 = vadd.f32 %v2335_v40, %v2334_v37 }
0x10cb   :  { %v2339_v44 = vmul.f32 0.125, %v2336_v41 }
0x10cd   :  { %v2345_v45 = vsel %vm2344_vm7, %v2339_v44, %v2338_v42 }
0x10ce   :  { %v2348_v46 = vsel %vm2347_vm8, %v2345_v45, 0.0 }
0x10cf   :  { %2349 = vadd.xlane.f32.xlu1 %v2348_v46 }
0x115c   :  { %v2350_v47 = vpop.xlane.xlu1 %2349 }
0x115d   :  { %v2351_v48 = vmul.f32 0.03125, %v2350_v47 }
0x115f   :  { %v2353_v49 = vrot.slane %v2351_v48, 1  ;;  %v2356_v50 = vsub.f32 %v2338_v42, %v2351_v48 }
0x1161   :  { %v2357_v51 = vsub.f32 %v2339_v44, %v2353_v49  ;;  %v2358_v53 = vmul.f32 %v2356_v50, %v2356_v50 }
0x1163   :  { %v2359_v52 = vmul.f32 %v2357_v51, %v2357_v51 }
0x1165   :  { %v2362_v56 = vrot.slane %v2359_v52, 7 }
0x1167   :  { %v2363_v26 = vsel %vm2344_vm7, %v2362_v56, %v2358_v53 }
0x1168   :  { %v2365_v57 = vsel %vm2347_vm8, %v2363_v26, 0.0 }
0x1169   :  { %2366 = vadd.xlane.f32.xlu0 %v2365_v57 }
0x11f6   :  { %v2367_v0 = vpop.xlane.xlu0 %2366 }
0x11f7   :  { %v2368_v1 = vmul.f32 0.03125, %v2367_v0 }
0x11f9   :  { %v2369_v2 = vadd.f32 1e-05, %v2368_v1 }
0x11fb   :  { %3134 = vrsqrt.f32 %v2369_v2 }
0x1205   :  { %v3135_v3 = vpop.eup %3134 }
0x1206   :  { %v2372_v6 = vrot.slane %v3135_v3, 1  ;;  %v2375_v8 = vmul.f32 %v3135_v3, %v2356_v50 }
0x1208   :  { %v2376_v9 = vmul.f32 %v2372_v6, %v2357_v51  ;;  %v2383_v10 = vmul.f32 %v2574_v4, %v2375_v8 }
0x120a   :  { %v2384_v19 = vmul.f32 %v2574_v4, %v2376_v9  ;;  %v2391_v43 = vadd.f32 %v2575_v17, %v2383_v10 }
0x120c   :  { %v2392_v39 = vadd.f32 %v2575_v17, %v2384_v19  ;;  %v2393_v12 = vmax.f32 %v2391_v43, 0.0 }
0x120e   :  { %v2394_v11 = vmax.f32 %v2392_v39, 0.0 }
0x1210   :  { %v2408_v35 = vrot.slane %v2394_v11, 7 }
0x1212   :  { %v2409_v55 = vsel %vm2344_vm7, %v2408_v35, %v2393_v12 }
0x1213   :  { %2836 = vmatmul.mubr.msk.f32.vlgmr.msra.gmra.mrb[20].mxu1 %vm163_vm0, %v2409_v55 }
0x12e6   :  { %v2478_v54 = vpop.f32.mrb[20].mxu1 }
0x12e7   :  { %v2479_v15 = vadd.f32 %v2576_v14, %v2478_v54  ;;  %v2837_v16 = vpop.f32.mrb[21].mxu1 }
0x12e9   :  { %2483 = vst.msk [vmem:[#allocation14] sm:$0x3] %vm2482_vm10, %v2479_v15 }
0x12ea   :  { %3301 = shalt.err (!%p3298_p4)
}
0x12eb   :  { %s3302_s10 = scalar_lea.hbm %s3865_s13, 32 }
0x12ec   :  { %p3303_p5 = scmp.ne.s32.totalorder %s3865_s13, %s3302_s10  ;;  %p3306_p6 = scmp.lt.u32.totalorder %s3302_s10, %s3865_s13 }
0x12ee   :  { %p3308_p7 = pnand %p3306_p6, %p3303_p5 }
0x12f0   :  { %3311 = shalt.err (!%p3308_p7)
}
0x12f1   :  { %2493 = dma.vmem_to_hbm [thread:$0]  %s2491_s15, 32, %s3865_s13, [#allocation4]  }
0x12f2   :  { %3320 = dma.done.wait [#allocation4], 32  }
0x12f3   :  { %3321 = vsyncadd [#allocation4], 4294967264 }
0x12f4   :  { %2497 = vsyncpa [#allocation3], 1 }
0x12f5   :  { %2498 = vsyncpa [#allocation6], 1 }
0x12f6   :  { %2499 = vsyncpa [#allocation9], 1 }
0x12f7   :  { %2500 = vsyncpa [#allocation12], 1 }
0x12f8   :  { %2501 = vsyncpa [#allocation4], 1 }

</bundles_post_ra>
